<compile_context>
chip_gen: v6e
topology: v6e:2x2x1
jax: 0.10.0
libtpu: 0.0.40
codegen_flags: <defaults>
</compile_context>

<pallas_src>
import jax
import jax.numpy as jnp
from jax.experimental import pallas as pl
from jax.experimental.pallas import tpu as pltpu


# ----------------------------------------------------------------------------
# Pallas kernels
# ----------------------------------------------------------------------------
def _conv_pool_kernel(x_ref, w_ref, b_ref, o_ref):
    """Fused conv (one long matmul) + folded-BN bias + tanh + 2x2 pool tap-sum.

    x_ref: (TB*4*Np_pad, K) bf16  im2col rows ordered (sample, pool-tap, window)
    w_ref: (K, Cout) bf16         conv weights, BN scale (and upstream 1/4) folded
    b_ref: (1, Cout) f32          conv bias with BN folded in
    o_ref: (TB, Np_pad, Cout) bf16  sum over the 4 pool taps (1/4 factor is
                                    folded into the NEXT layer's weights)
    """
    tb, np_pad, cout = o_ref.shape
    # Single streamed MXU matmul over all samples/taps/windows in the block.
    y = jnp.dot(x_ref[...], w_ref[...], preferred_element_type=jnp.float32)
    y = jnp.tanh(y + b_ref[...])                      # f32 epilogue (v5e-safe)
    # Tile-aligned split (np_pad % 16 == 0), then tap reduction on the VPU.
    y = y.reshape(tb, 4, np_pad, cout)
    pooled = y[:, 0] + y[:, 1] + y[:, 2] + y[:, 3]
    o_ref[...] = pooled.astype(o_ref.dtype)


def _head_kernel(x_ref, w3_ref, b3_ref, w4_ref, b4_ref, w5_ref, b5_ref, o_ref):
    """Fused head: conv3(as 400->120 matmul)+BN+tanh -> fc1+tanh -> fc2.

    x_ref: (TB, 400) bf16; weights bf16; biases f32; o_ref: (TB, nc) f32.
    """
    h = jnp.tanh(
        jnp.dot(x_ref[...], w3_ref[...], preferred_element_type=jnp.float32)
        + b3_ref[...])
    h = jnp.tanh(
        jnp.dot(h.astype(jnp.bfloat16), w4_ref[...],
                preferred_element_type=jnp.float32) + b4_ref[...])
    o = jnp.dot(h.astype(jnp.bfloat16), w5_ref[...],
                preferred_element_type=jnp.float32) + b5_ref[...]
    o_ref[...] = o.astype(o_ref.dtype)


# ----------------------------------------------------------------------------
# Plain-JAX glue: im2col with rows grouped (sample, pool-tap, pool-window)
# ----------------------------------------------------------------------------
def _im2col_pool_grouped(x, k, np_pad):
    """x: (B, H, W, C) -> (B*4*np_pad, k*k*C) patch rows.

    Patch columns ordered (kh, kw, cin).  Rows are ordered (sample, pool-tap,
    pool-window); rows [Np, np_pad) of each tap group are zero padding so the
    per-tap row count is sublane-aligned for the in-kernel reshape.
    """
    B, H, W, C = x.shape
    Ho, Wo = H - k + 1, W - k + 1
    taps = [x[:, di:di + Ho, dj:dj + Wo, :]
            for di in range(k) for dj in range(k)]
    p = jnp.stack(taps, axis=3).reshape(B, Ho, Wo, k * k * C)
    Hp, Wp = Ho // 2, Wo // 2
    Np = Hp * Wp
    groups = [p[:, ti::2, tj::2, :].reshape(B, Np, k * k * C)
              for ti in (0, 1) for tj in (0, 1)]
    g = jnp.stack(groups, axis=1)                       # (B, 4, Np, K)
    g = jnp.pad(g, ((0, 0), (0, 0), (0, np_pad - Np), (0, 0)))
    return g.reshape(B * 4 * np_pad, k * k * C)


def _round_up(x, m):
    return (x + m - 1) // m * m


def _pick_batch_tile(b, cap, align=1):
    """Largest tile <= cap that divides b (multiple of `align` if possible)."""
    if b <= cap:
        return b
    tb = (cap // align) * align
    while tb >= align:
        if b % tb == 0:
            return tb
        tb -= align
    return b  # fallback: whole batch in one block


# ----------------------------------------------------------------------------
# Wrappers around pallas_call
# ----------------------------------------------------------------------------
def conv_bn_tanh_pool(x_nhwc, w_bf16, bias_f32, *, k=5, tb_cap=8):
    """One LeNet conv stage: conv(k x k, valid) + folded BN + tanh + 2x2 avgpool.

    Returns the pooled map scaled by 4 (the 1/4 pool factor is folded into the
    next layer's weights), shape (B, Hp, Wp, Cout), bf16.
    """
    B, H, W, C = x_nhwc.shape
    Ho, Wo = H - k + 1, W - k + 1
    assert Ho % 2 == 0 and Wo % 2 == 0
    Hp, Wp = Ho // 2, Wo // 2
    Np = Hp * Wp
    Np_pad = _round_up(Np, 16)       # sublane-aligned per-tap rows (bf16 tile)
    K = k * k * C
    Cout = w_bf16.shape[-1]

    if x_nhwc.dtype != jnp.bfloat16:     # only the raw f32 image needs a cast
        x_nhwc = x_nhwc.astype(jnp.bfloat16)

    # tb_cap keeps the lane-padded f32 matmul intermediate (TB*4*Np_pad rows x
    # 128 lanes) comfortably inside scoped VMEM on all of v5e/v6e/v7x.
    TB = _pick_batch_tile(B, tb_cap)
    rows_blk = TB * 4 * Np_pad

    patches = _im2col_pool_grouped(x_nhwc, k, Np_pad)   # (B*4*Np_pad, K) bf16
    bias2d = bias_f32.reshape(1, Cout)

    cost = pl.CostEstimate(
        flops=2 * B * 4 * Np_pad * K * Cout,
        transcendentals=B * 4 * Np_pad * Cout,
        bytes_accessed=patches.size * 2 + w_bf16.size * 2
        + bias2d.size * 4 + B * Np_pad * Cout * 2,
    )
    out = pl.pallas_call(
        _conv_pool_kernel,
        out_shape=jax.ShapeDtypeStruct((B, Np_pad, Cout), jnp.bfloat16),
        grid=(B // TB,),
        in_specs=[
            pl.BlockSpec((rows_blk, K), lambda i: (i, 0)),
            pl.BlockSpec((K, Cout), lambda i: (0, 0)),    # weights stay resident
            pl.BlockSpec((1, Cout), lambda i: (0, 0)),
        ],
        out_specs=pl.BlockSpec((TB, Np_pad, Cout), lambda i: (i, 0, 0)),
        compiler_params=pltpu.CompilerParams(
            dimension_semantics=("parallel",),            # shards batch across TCs
            vmem_limit_bytes=32 * 1024 * 1024),
        cost_estimate=cost,
    )(patches, w_bf16, bias2d)
    # Drop per-tap padding rows, restore the (B, Hp, Wp, Cout) feature map.
    return out[:, :Np, :].reshape(B, Hp, Wp, Cout)


def mlp_head(x_flat, p3, p4, p5, *, tb_cap=256):
    """Fused conv3(+BN)+tanh -> fc1+tanh -> fc2 head on flattened (B, 400)."""
    B, K0 = x_flat.shape
    w3, b3 = p3["w"], p3["b"].reshape(1, -1)
    w4, b4 = p4["w"], p4["b"].reshape(1, -1)
    w5, b5 = p5["w"], p5["b"].reshape(1, -1)
    assert w3.shape[0] == K0
    h1, h2, nc = w3.shape[1], w4.shape[1], w5.shape[1]

    if x_flat.dtype != jnp.bfloat16:     # conv2 stage already emits bf16
        x_flat = x_flat.astype(jnp.bfloat16)

    # TB must equal B or be a multiple of 8 (block second-minor constraint).
    TB = _pick_batch_tile(B, tb_cap, align=8)

    cost = pl.CostEstimate(
        flops=2 * B * (K0 * h1 + h1 * h2 + h2 * nc),
        transcendentals=B * (h1 + h2),
        bytes_accessed=(x_flat.size + w3.size + w4.size + w5.size) * 2
        + (b3.size + b4.size + b5.size) * 4 + B * nc * 4,
    )
    return pl.pallas_call(
        _head_kernel,
        out_shape=jax.ShapeDtypeStruct((B, nc), jnp.float32),
        grid=(B // TB,),
        in_specs=[
            pl.BlockSpec((TB, K0), lambda i: (i, 0)),
            pl.BlockSpec((K0, h1), lambda i: (0, 0)),
            pl.BlockSpec((1, h1), lambda i: (0, 0)),
            pl.BlockSpec((h1, h2), lambda i: (0, 0)),
            pl.BlockSpec((1, h2), lambda i: (0, 0)),
            pl.BlockSpec((h2, nc), lambda i: (0, 0)),
            pl.BlockSpec((1, nc), lambda i: (0, 0)),
        ],
        out_specs=pl.BlockSpec((TB, nc), lambda i: (i, 0)),
        compiler_params=pltpu.CompilerParams(
            dimension_semantics=("parallel",)),
        cost_estimate=cost,
    )(x_flat, w3, b3, w4, b4, w5, b5)


# ----------------------------------------------------------------------------
# Parameter construction (deterministic, synthetic) + BN / pool-scale folding
# ----------------------------------------------------------------------------
def _fold_bn(conv_bias, gamma, beta, run_mean, run_var, eps=1e-5):
    scale = gamma / jnp.sqrt(run_var + eps)
    fused_bias = (conv_bias - run_mean) * scale + beta
    return scale, fused_bias


def make_params(key, num_classes):
    """Synthetic inference params with BN and the preceding 2x2 AvgPool's 1/4
    factor pre-folded into the (bf16) matmul weights."""
    def conv_bn(key, cin, cout, k, pre_scale=1.0):
        ks = jax.random.split(key, 6)
        w = jax.random.normal(ks[0], (k, k, cin, cout), jnp.float32) * 0.1
        cb = jax.random.normal(ks[1], (cout,), jnp.float32) * 0.05
        gamma = 1.0 + 0.1 * jax.random.normal(ks[2], (cout,), jnp.float32)
        beta = 0.1 * jax.random.normal(ks[3], (cout,), jnp.float32)
        rm = 0.05 * jax.random.normal(ks[4], (cout,), jnp.float32)
        rv = 1.0 + 0.1 * jnp.abs(jax.random.normal(ks[5], (cout,), jnp.float32))
        scale, bias = _fold_bn(cb, gamma, beta, rm, rv)
        # Fold BN scale and the upstream pool 1/4 into the weight columns in
        # f32, THEN cast to bf16.  Column order is (kh, kw, cin).
        w_folded = (w * scale * pre_scale).reshape(k * k * cin, cout)
        return {"w": w_folded.astype(jnp.bfloat16),
                "b": bias.astype(jnp.float32)}

    def linear(key, fin, fout):
        k1, k2 = jax.random.split(key)
        w = jax.random.normal(k1, (fin, fout), jnp.float32) * 0.1
        b = jax.random.normal(k2, (fout,), jnp.float32) * 0.05
        return {"w": w.astype(jnp.bfloat16), "b": b}

    k1, k2, k3, k4, k5 = jax.random.split(key, 5)
    return {
        "conv1": conv_bn(k1, 1, 6, 5),
        # conv stages store the 2x2-pool tap-SUM; the 1/4 is folded downstream:
        "conv2": conv_bn(k2, 6, 16, 5, pre_scale=0.25),
        "conv3": conv_bn(k3, 16, 120, 5, pre_scale=0.25),
        "fc1": linear(k4, 120, 84),
        "fc2": linear(k5, 84, num_classes),
    }


# ----------------------------------------------------------------------------
# Full LeNet-5 forward
# ----------------------------------------------------------------------------
def lenet5_forward(x_nchw, params):
    # x_nchw: (B, 1, 32, 32) float32 (PyTorch layout) -> logits (B, num_classes)
    B, C, H, W = x_nchw.shape
    assert C == 1 and H == 32 and W == 32, "LeNet-5 expects (B, 1, 32, 32) input"
    x = jnp.transpose(x_nchw, (0, 2, 3, 1))                 # NHWC

    # conv1 (1->6, k5) + BN + tanh + avgpool2   -> (B, 14, 14, 6)  [x4, bf16]
    y = conv_bn_tanh_pool(x, params["conv1"]["w"], params["conv1"]["b"],
                          tb_cap=8)
    # conv2 (6->16, k5) + BN + tanh + avgpool2  -> (B, 5, 5, 16)   [x4, bf16]
    y = conv_bn_tanh_pool(y, params["conv2"]["w"], params["conv2"]["b"],
                          tb_cap=32)

    # Flatten in (h, w, c) order == conv3 (kh, kw, cin) patch order -> (B, 400)
    y = y.reshape(B, 5 * 5 * 16)

    # Fused head: conv3+BN+tanh -> fc1+tanh -> fc2
    return mlp_head(y, params["conv3"], params["fc1"], params["fc2"])


if __name__ == "__main__":
    num_classes = 10
    key = jax.random.PRNGKey(0)
    k_x, k_p = jax.random.split(key)

    # LeNet-5 requires 32x32 spatial input (conv3 consumes a 5x5 feature map).
    x = jax.random.normal(k_x, (2, 1, 32, 32), jnp.float32)
    params = make_params(k_p, num_classes)

    forward = jax.jit(lenet5_forward)
    logits = forward(x, params)
    jax.block_until_ready(logits)
    assert logits.shape == (2, num_classes)
    assert bool(jnp.all(jnp.isfinite(logits)))
    print("KERNEL_OK")
</pallas_src>

<mosaic_0001>
module attributes {stable_mosaic.version = 11 : i64} {
  func.func @_conv_pool_kernel(%arg0: i32, %arg1: memref<1664x25xbf16, #tpu.memory_space<vmem>>, %arg2: memref<25x6xbf16, #tpu.memory_space<vmem>>, %arg3: memref<1x6xf32, #tpu.memory_space<vmem>>, %arg4: memref<2x208x6xbf16, #tpu.memory_space<vmem>>) attributes {dimension_semantics = [#tpu.dimension_semantics<parallel>], iteration_bounds = array<i64: 1>, scalar_prefetch = 0 : i64, scratch_operands = 0 : i64, tpu.core_type = #tpu.core_type<tc>, window_params = [{transform_indices = @transform_0, window_bounds = array<i64: 1664, 25>}, {pipeline_mode = #tpu.pipeline_mode<synchronous>, transform_indices = @transform_1, window_bounds = array<i64: 25, 6>}, {pipeline_mode = #tpu.pipeline_mode<synchronous>, transform_indices = @transform_2, window_bounds = array<i64: 1, 6>}, {transform_indices = @transform_3, window_bounds = array<i64: 2, 208, 6>}]} {
    %c0 = arith.constant 0 : index
    %c0_0 = arith.constant 0 : index
    %0 = vector.load %arg1[%c0, %c0_0] : memref<1664x25xbf16, #tpu.memory_space<vmem>>, vector<1664x25xbf16>
    %c0_1 = arith.constant 0 : index
    %c0_2 = arith.constant 0 : index
    %1 = vector.load %arg2[%c0_1, %c0_2] : memref<25x6xbf16, #tpu.memory_space<vmem>>, vector<25x6xbf16>
    %cst = arith.constant dense<0.000000e+00> : vector<1664x6xf32>
    %2 = tpu.matmul %0, %1, %cst {dimension_numbers = #tpu.dot_dimension_numbers<[1], [0], [0], [1], [0, 0, 1, 1], [], []>} : vector<1664x25xbf16>, vector<25x6xbf16>, vector<1664x6xf32> -> vector<1664x6xf32>
    %c0_3 = arith.constant 0 : index
    %c0_4 = arith.constant 0 : index
    %3 = vector.load %arg3[%c0_3, %c0_4] : memref<1x6xf32, #tpu.memory_space<vmem>>, vector<1x6xf32>
    %4 = vector.broadcast %3 : vector<1x6xf32> to vector<1664x6xf32>
    %5 = arith.addf %2, %4 : vector<1664x6xf32>
    %6 = math.tanh %5 : vector<1664x6xf32>
    %7 = vector.shape_cast %6 : vector<1664x6xf32> to vector<2x4x208x6xf32>
    %8 = vector.extract_strided_slice %7 {offsets = [0, 0, 0, 0], sizes = [2, 1, 208, 6], strides = [1, 1, 1, 1]} : vector<2x4x208x6xf32> to vector<2x1x208x6xf32>
    %9 = vector.shape_cast %8 : vector<2x1x208x6xf32> to vector<2x208x6xf32>
    %10 = vector.extract_strided_slice %7 {offsets = [0, 1, 0, 0], sizes = [2, 1, 208, 6], strides = [1, 1, 1, 1]} : vector<2x4x208x6xf32> to vector<2x1x208x6xf32>
    %11 = vector.shape_cast %10 : vector<2x1x208x6xf32> to vector<2x208x6xf32>
    %12 = arith.addf %9, %11 : vector<2x208x6xf32>
    %13 = vector.extract_strided_slice %7 {offsets = [0, 2, 0, 0], sizes = [2, 1, 208, 6], strides = [1, 1, 1, 1]} : vector<2x4x208x6xf32> to vector<2x1x208x6xf32>
    %14 = vector.shape_cast %13 : vector<2x1x208x6xf32> to vector<2x208x6xf32>
    %15 = arith.addf %12, %14 : vector<2x208x6xf32>
    %16 = vector.extract_strided_slice %7 {offsets = [0, 3, 0, 0], sizes = [2, 1, 208, 6], strides = [1, 1, 1, 1]} : vector<2x4x208x6xf32> to vector<2x1x208x6xf32>
    %17 = vector.shape_cast %16 : vector<2x1x208x6xf32> to vector<2x208x6xf32>
    %18 = arith.addf %15, %17 : vector<2x208x6xf32>
    %19 = arith.truncf %18 : vector<2x208x6xf32> to vector<2x208x6xbf16>
    %c0_5 = arith.constant 0 : index
    %c0_6 = arith.constant 0 : index
    %c0_7 = arith.constant 0 : index
    %20 = vector.load %arg4[%c0_5, %c0_6, %c0_7] : memref<2x208x6xbf16, #tpu.memory_space<vmem>>, vector<2x208x6xbf16>
    tpu.vector_store %arg4[%c0_5, %c0_6, %c0_7], %19 {strides = array<i32>} : memref<2x208x6xbf16, #tpu.memory_space<vmem>>, vector<2x208x6xbf16>,
    return
  }
  func.func @transform_0(%arg0: i32) -> (i32, i32) {
    %c0_i32 = arith.constant 0 : i32
    %c0_i32_0 = arith.constant 0 : i32
    return %arg0, %c0_i32 : i32, i32
  }
  func.func @transform_1(%arg0: i32) -> (i32, i32) {
    %c0_i32 = arith.constant 0 : i32
    %c0_i32_0 = arith.constant 0 : i32
    %c0_i32_1 = arith.constant 0 : i32
    return %c0_i32, %c0_i32_0 : i32, i32
  }
  func.func @transform_2(%arg0: i32) -> (i32, i32) {
    %c0_i32 = arith.constant 0 : i32
    %c0_i32_0 = arith.constant 0 : i32
    %c0_i32_1 = arith.constant 0 : i32
    return %c0_i32, %c0_i32_0 : i32, i32
  }
  func.func @transform_3(%arg0: i32) -> (i32, i32, i32) {
    %c0_i32 = arith.constant 0 : i32
    %c0_i32_0 = arith.constant 0 : i32
    %c0_i32_1 = arith.constant 0 : i32
    return %arg0, %c0_i32, %c0_i32_0 : i32, i32, i32
  }
}

module attributes {stable_mosaic.version = 11 : i64} {
  func.func @_conv_pool_kernel(%arg0: i32, %arg1: memref<256x150xbf16, #tpu.memory_space<vmem>>, %arg2: memref<150x16xbf16, #tpu.memory_space<vmem>>, %arg3: memref<1x16xf32, #tpu.memory_space<vmem>>, %arg4: memref<2x32x16xbf16, #tpu.memory_space<vmem>>) attributes {dimension_semantics = [#tpu.dimension_semantics<parallel>], iteration_bounds = array<i64: 1>, scalar_prefetch = 0 : i64, scratch_operands = 0 : i64, tpu.core_type = #tpu.core_type<tc>, window_params = [{transform_indices = @transform_0, window_bounds = array<i64: 256, 150>}, {pipeline_mode = #tpu.pipeline_mode<synchronous>, transform_indices = @transform_1, window_bounds = array<i64: 150, 16>}, {pipeline_mode = #tpu.pipeline_mode<synchronous>, transform_indices = @transform_2, window_bounds = array<i64: 1, 16>}, {transform_indices = @transform_3, window_bounds = array<i64: 2, 32, 16>}]} {
    %c0 = arith.constant 0 : index
    %c0_0 = arith.constant 0 : index
    %0 = vector.load %arg1[%c0, %c0_0] : memref<256x150xbf16, #tpu.memory_space<vmem>>, vector<256x150xbf16>
    %c0_1 = arith.constant 0 : index
    %c0_2 = arith.constant 0 : index
    %1 = vector.load %arg2[%c0_1, %c0_2] : memref<150x16xbf16, #tpu.memory_space<vmem>>, vector<150x16xbf16>
    %cst = arith.constant dense<0.000000e+00> : vector<256x16xf32>
    %2 = tpu.matmul %0, %1, %cst {dimension_numbers = #tpu.dot_dimension_numbers<[1], [0], [0], [1], [0, 0, 1, 1], [], []>} : vector<256x150xbf16>, vector<150x16xbf16>, vector<256x16xf32> -> vector<256x16xf32>
    %c0_3 = arith.constant 0 : index
    %c0_4 = arith.constant 0 : index
    %3 = vector.load %arg3[%c0_3, %c0_4] : memref<1x16xf32, #tpu.memory_space<vmem>>, vector<1x16xf32>
    %4 = vector.broadcast %3 : vector<1x16xf32> to vector<256x16xf32>
    %5 = arith.addf %2, %4 : vector<256x16xf32>
    %6 = math.tanh %5 : vector<256x16xf32>
    %7 = vector.shape_cast %6 : vector<256x16xf32> to vector<2x4x32x16xf32>
    %8 = vector.extract_strided_slice %7 {offsets = [0, 0, 0, 0], sizes = [2, 1, 32, 16], strides = [1, 1, 1, 1]} : vector<2x4x32x16xf32> to vector<2x1x32x16xf32>
    %9 = vector.shape_cast %8 : vector<2x1x32x16xf32> to vector<2x32x16xf32>
    %10 = vector.extract_strided_slice %7 {offsets = [0, 1, 0, 0], sizes = [2, 1, 32, 16], strides = [1, 1, 1, 1]} : vector<2x4x32x16xf32> to vector<2x1x32x16xf32>
    %11 = vector.shape_cast %10 : vector<2x1x32x16xf32> to vector<2x32x16xf32>
    %12 = arith.addf %9, %11 : vector<2x32x16xf32>
    %13 = vector.extract_strided_slice %7 {offsets = [0, 2, 0, 0], sizes = [2, 1, 32, 16], strides = [1, 1, 1, 1]} : vector<2x4x32x16xf32> to vector<2x1x32x16xf32>
    %14 = vector.shape_cast %13 : vector<2x1x32x16xf32> to vector<2x32x16xf32>
    %15 = arith.addf %12, %14 : vector<2x32x16xf32>
    %16 = vector.extract_strided_slice %7 {offsets = [0, 3, 0, 0], sizes = [2, 1, 32, 16], strides = [1, 1, 1, 1]} : vector<2x4x32x16xf32> to vector<2x1x32x16xf32>
    %17 = vector.shape_cast %16 : vector<2x1x32x16xf32> to vector<2x32x16xf32>
    %18 = arith.addf %15, %17 : vector<2x32x16xf32>
    %19 = arith.truncf %18 : vector<2x32x16xf32> to vector<2x32x16xbf16>
    %c0_5 = arith.constant 0 : index
    %c0_6 = arith.constant 0 : index
    %c0_7 = arith.constant 0 : index
    %20 = vector.load %arg4[%c0_5, %c0_6, %c0_7] : memref<2x32x16xbf16, #tpu.memory_space<vmem>>, vector<2x32x16xbf16>
    tpu.vector_store %arg4[%c0_5, %c0_6, %c0_7], %19 {strides = array<i32>} : memref<2x32x16xbf16, #tpu.memory_space<vmem>>, vector<2x32x16xbf16>,
    return
  }
  func.func @transform_0(%arg0: i32) -> (i32, i32) {
    %c0_i32 = arith.constant 0 : i32
    %c0_i32_0 = arith.constant 0 : i32
    return %arg0, %c0_i32 : i32, i32
  }
  func.func @transform_1(%arg0: i32) -> (i32, i32) {
    %c0_i32 = arith.constant 0 : i32
    %c0_i32_0 = arith.constant 0 : i32
    %c0_i32_1 = arith.constant 0 : i32
    return %c0_i32, %c0_i32_0 : i32, i32
  }
  func.func @transform_2(%arg0: i32) -> (i32, i32) {
    %c0_i32 = arith.constant 0 : i32
    %c0_i32_0 = arith.constant 0 : i32
    %c0_i32_1 = arith.constant 0 : i32
    return %c0_i32, %c0_i32_0 : i32, i32
  }
  func.func @transform_3(%arg0: i32) -> (i32, i32, i32) {
    %c0_i32 = arith.constant 0 : i32
    %c0_i32_0 = arith.constant 0 : i32
    %c0_i32_1 = arith.constant 0 : i32
    return %arg0, %c0_i32, %c0_i32_0 : i32, i32, i32
  }
}

module attributes {stable_mosaic.version = 11 : i64} {
  func.func @_head_kernel(%arg0: i32, %arg1: memref<2x400xbf16, #tpu.memory_space<vmem>>, %arg2: memref<400x120xbf16, #tpu.memory_space<vmem>>, %arg3: memref<1x120xf32, #tpu.memory_space<vmem>>, %arg4: memref<120x84xbf16, #tpu.memory_space<vmem>>, %arg5: memref<1x84xf32, #tpu.memory_space<vmem>>, %arg6: memref<84x10xbf16, #tpu.memory_space<vmem>>, %arg7: memref<1x10xf32, #tpu.memory_space<vmem>>, %arg8: memref<2x10xf32, #tpu.memory_space<vmem>>) attributes {dimension_semantics = [#tpu.dimension_semantics<parallel>], iteration_bounds = array<i64: 1>, scalar_prefetch = 0 : i64, scratch_operands = 0 : i64, tpu.core_type = #tpu.core_type<tc>, window_params = [{transform_indices = @transform_0, window_bounds = array<i64: 2, 400>}, {pipeline_mode = #tpu.pipeline_mode<synchronous>, transform_indices = @transform_1, window_bounds = array<i64: 400, 120>}, {pipeline_mode = #tpu.pipeline_mode<synchronous>, transform_indices = @transform_2, window_bounds = array<i64: 1, 120>}, {pipeline_mode = #tpu.pipeline_mode<synchronous>, transform_indices = @transform_3, window_bounds = array<i64: 120, 84>}, {pipeline_mode = #tpu.pipeline_mode<synchronous>, transform_indices = @transform_4, window_bounds = array<i64: 1, 84>}, {pipeline_mode = #tpu.pipeline_mode<synchronous>, transform_indices = @transform_5, window_bounds = array<i64: 84, 10>}, {pipeline_mode = #tpu.pipeline_mode<synchronous>, transform_indices = @transform_6, window_bounds = array<i64: 1, 10>}, {transform_indices = @transform_7, window_bounds = array<i64: 2, 10>}]} {
    %c0 = arith.constant 0 : index
    %c0_0 = arith.constant 0 : index
    %0 = vector.load %arg1[%c0, %c0_0] : memref<2x400xbf16, #tpu.memory_space<vmem>>, vector<2x400xbf16>
    %c0_1 = arith.constant 0 : index
    %c0_2 = arith.constant 0 : index
    %1 = vector.load %arg2[%c0_1, %c0_2] : memref<400x120xbf16, #tpu.memory_space<vmem>>, vector<400x120xbf16>
    %cst = arith.constant dense<0.000000e+00> : vector<2x120xf32>
    %2 = tpu.matmul %0, %1, %cst {dimension_numbers = #tpu.dot_dimension_numbers<[1], [0], [0], [1], [0, 0, 1, 1], [], []>} : vector<2x400xbf16>, vector<400x120xbf16>, vector<2x120xf32> -> vector<2x120xf32>
    %c0_3 = arith.constant 0 : index
    %c0_4 = arith.constant 0 : index
    %3 = vector.load %arg3[%c0_3, %c0_4] : memref<1x120xf32, #tpu.memory_space<vmem>>, vector<1x120xf32>
    %4 = vector.broadcast %3 : vector<1x120xf32> to vector<2x120xf32>
    %5 = arith.addf %2, %4 : vector<2x120xf32>
    %6 = math.tanh %5 : vector<2x120xf32>
    %7 = arith.truncf %6 : vector<2x120xf32> to vector<2x120xbf16>
    %c0_5 = arith.constant 0 : index
    %c0_6 = arith.constant 0 : index
    %8 = vector.load %arg4[%c0_5, %c0_6] : memref<120x84xbf16, #tpu.memory_space<vmem>>, vector<120x84xbf16>
    %cst_7 = arith.constant dense<0.000000e+00> : vector<2x84xf32>
    %9 = tpu.matmul %7, %8, %cst_7 {dimension_numbers = #tpu.dot_dimension_numbers<[1], [0], [0], [1], [0, 0, 1, 1], [], []>} : vector<2x120xbf16>, vector<120x84xbf16>, vector<2x84xf32> -> vector<2x84xf32>
    %c0_8 = arith.constant 0 : index
    %c0_9 = arith.constant 0 : index
    %10 = vector.load %arg5[%c0_8, %c0_9] : memref<1x84xf32, #tpu.memory_space<vmem>>, vector<1x84xf32>
    %11 = vector.broadcast %10 : vector<1x84xf32> to vector<2x84xf32>
    %12 = arith.addf %9, %11 : vector<2x84xf32>
    %13 = math.tanh %12 : vector<2x84xf32>
    %14 = arith.truncf %13 : vector<2x84xf32> to vector<2x84xbf16>
    %c0_10 = arith.constant 0 : index
    %c0_11 = arith.constant 0 : index
    %15 = vector.load %arg6[%c0_10, %c0_11] : memref<84x10xbf16, #tpu.memory_space<vmem>>, vector<84x10xbf16>
    %cst_12 = arith.constant dense<0.000000e+00> : vector<2x10xf32>
    %16 = tpu.matmul %14, %15, %cst_12 {dimension_numbers = #tpu.dot_dimension_numbers<[1], [0], [0], [1], [0, 0, 1, 1], [], []>} : vector<2x84xbf16>, vector<84x10xbf16>, vector<2x10xf32> -> vector<2x10xf32>
    %c0_13 = arith.constant 0 : index
    %c0_14 = arith.constant 0 : index
    %17 = vector.load %arg7[%c0_13, %c0_14] : memref<1x10xf32, #tpu.memory_space<vmem>>, vector<1x10xf32>
    %18 = vector.broadcast %17 : vector<1x10xf32> to vector<2x10xf32>
    %19 = arith.addf %16, %18 : vector<2x10xf32>
    %c0_15 = arith.constant 0 : index
    %c0_16 = arith.constant 0 : index
    %20 = vector.load %arg8[%c0_15, %c0_16] : memref<2x10xf32, #tpu.memory_space<vmem>>, vector<2x10xf32>
    tpu.vector_store %arg8[%c0_15, %c0_16], %19 {strides = array<i32>} : memref<2x10xf32, #tpu.memory_space<vmem>>, vector<2x10xf32>,
    return
  }
  func.func @transform_0(%arg0: i32) -> (i32, i32) {
    %c0_i32 = arith.constant 0 : i32
    %c0_i32_0 = arith.constant 0 : i32
    return %arg0, %c0_i32 : i32, i32
  }
  func.func @transform_1(%arg0: i32) -> (i32, i32) {
    %c0_i32 = arith.constant 0 : i32
    %c0_i32_0 = arith.constant 0 : i32
    %c0_i32_1 = arith.constant 0 : i32
    return %c0_i32, %c0_i32_0 : i32, i32
  }
  func.func @transform_2(%arg0: i32) -> (i32, i32) {
    %c0_i32 = arith.constant 0 : i32
    %c0_i32_0 = arith.constant 0 : i32
    %c0_i32_1 = arith.constant 0 : i32
    return %c0_i32, %c0_i32_0 : i32, i32
  }
  func.func @transform_3(%arg0: i32) -> (i32, i32) {
    %c0_i32 = arith.constant 0 : i32
    %c0_i32_0 = arith.constant 0 : i32
    %c0_i32_1 = arith.constant 0 : i32
    return %c0_i32, %c0_i32_0 : i32, i32
  }
  func.func @transform_4(%arg0: i32) -> (i32, i32) {
    %c0_i32 = arith.constant 0 : i32
    %c0_i32_0 = arith.constant 0 : i32
    %c0_i32_1 = arith.constant 0 : i32
    return %c0_i32, %c0_i32_0 : i32, i32
  }
  func.func @transform_5(%arg0: i32) -> (i32, i32) {
    %c0_i32 = arith.constant 0 : i32
    %c0_i32_0 = arith.constant 0 : i32
    %c0_i32_1 = arith.constant 0 : i32
    return %c0_i32, %c0_i32_0 : i32, i32
  }
  func.func @transform_6(%arg0: i32) -> (i32, i32) {
    %c0_i32 = arith.constant 0 : i32
    %c0_i32_0 = arith.constant 0 : i32
    %c0_i32_1 = arith.constant 0 : i32
    return %c0_i32, %c0_i32_0 : i32, i32
  }
  func.func @transform_7(%arg0: i32) -> (i32, i32) {
    %c0_i32 = arith.constant 0 : i32
    %c0_i32_0 = arith.constant 0 : i32
    return %arg0, %c0_i32 : i32, i32
  }
}

</mosaic_0001>

<bundles_post_ra>
// kernel: lenet5_forward.3
= control target key start
LH: loop header
LB: loop body
LE: loop exit
PB: predicated region body
PF: predicated region fallthrough
CT: control target
= control target key end

     0   :  { %vm1078_vm0 = vcmask 1043456   ;;  %vm1079_vm1 = vcmask 1044480   ;;  %v3740_v1 = vmov 65535   ;;  %vm765_vm2 = vcmask 203776   ;;  %s5191_s1 = inlined_call_operand.vmem [shape: bf16[25,6], index: 1, kind: input, shape index: {}]   ;;  %s5192_s0 = inlined_call_operand.vmem [shape: bf16[1664,25], index: 0, kind: input, shape index: {}]   ;;  %s5193_s2 = inlined_call_operand.vmem [shape: f32[1,6], index: 2, kind: input, shape index: {}]   ;;  %s5194_s3 = inlined_call_operand.vmem [shape: bf16[2,208,6], index: 3, kind: output, shape index: {}]  }
   0x1   :  { %v3217_v0 = vld [vmem:[%s5191_s1 + $0x8] sm:$0x1f]   ;;  %v1080_v2 = vsel %vm1078_vm0, 4294967295, %v3740_v1  ;;  %v3219_v4 = vld [vmem:[%s5192_s0] sm:$0xff]   ;;  %v3223_v10 = vld [vmem:[%s5192_s0 + $0x10] sm:$0xff]   ;;  %vm2522_vm3 = vcmask 44032  }
   0x2   :  { %v1081_v3 = vsel %vm1079_vm1, %v1080_v2, 0  ;;  %v3218_v6 = vld [vmem:[%s5191_s1] sm:$0xff]   ;;  %3004 = vmatprep.mubr.msk.bf16.mxu0 %vm765_vm2, %v3219_v4  ;;  %v3221_v8 = vld [vmem:[%s5192_s0 + $0x8] sm:$0xff]   ;;  %v3224_v11 = vld [vmem:[%s5192_s0 + $0x1b0] sm:$0xff]  }
   0x3   :  { %v1083_v5 = vand.u32 %v3217_v0, %v1081_v3  ;;  %v3220_v7 = vld [vmem:[%s5192_s0 + $0x1a0] sm:$0xff]   ;;  %v3222_v9 = vld [vmem:[%s5192_s0 + $0x1a8] sm:$0xff]   ;;  %v3225_v12 = vld [vmem:[%s5192_s0 + $0x18] sm:$0xff]  }
   0x4   :  { %3108 = vmatprep.mubr.msk.bf16.mxu1 %vm765_vm2, %v3220_v7  ;;  %v3226_v13 = vld [vmem:[%s5192_s0 + $0x1b8] sm:$0xff]   ;;  %v3227_v14 = vld [vmem:[%s5192_s0 + $0x20] sm:$0xff]   ;;  %v3229_v16 = vld [vmem:[%s5192_s0 + $0x28] sm:$0xff]  }
   0x5   :  { %3000 = vmatprep.subr.bf16.mxu0 %v1083_v5  ;;  %3212 = vmatprep.subr.bf16.mxu1 %v1083_v5  ;;  %v3228_v15 = vld [vmem:[%s5192_s0 + $0x1c0] sm:$0xff]   ;;  %v3230_v17 = vld [vmem:[%s5192_s0 + $0x1c8] sm:$0xff]   ;;  %v3231_v18 = vld [vmem:[%s5192_s0 + $0x30] sm:$0xff]  }
   0x6   :  { %3001 = vmatpush3.bf16.msra.mxu0 %v1083_v5  ;;  %3214 = vmatpush3.bf16.msra.mxu1 %v1083_v5  ;;  %v3232_v19 = vld [vmem:[%s5192_s0 + $0x1d0] sm:$0xff]   ;;  %v3233_v20 = vld [vmem:[%s5192_s0 + $0x38] sm:$0xff]   ;;  %v3235_v22 = vld [vmem:[%s5192_s0 + $0x40] sm:$0xff]  }
   0x7   :  { %3002 = vmatprep.subr.bf16.mxu0 %v3218_v6  ;;  %3213 = vmatprep.subr.bf16.mxu1 %v3218_v6  ;;  %v3234_v21 = vld [vmem:[%s5192_s0 + $0x1d8] sm:$0xff]   ;;  %v3236_v23 = vld [vmem:[%s5192_s0 + $0x1e0] sm:$0xff]   ;;  %v3237_v24 = vld [vmem:[%s5192_s0 + $0x48] sm:$0xff]  }
   0x8   :  { %v3238_v25 = vld [vmem:[%s5192_s0 + $0x1e8] sm:$0xff]   ;;  %v3239_v26 = vld [vmem:[%s5192_s0 + $0x50] sm:$0xff]   ;;  %v3241_v28 = vld [vmem:[%s5192_s0 + $0x58] sm:$0xff]  }
   0x9   :  { %v3240_v27 = vld [vmem:[%s5192_s0 + $0x1f0] sm:$0xff]   ;;  %v3242_v29 = vld [vmem:[%s5192_s0 + $0x1f8] sm:$0xff]   ;;  %v3243_v30 = vld [vmem:[%s5192_s0 + $0x60] sm:$0xff]  }
   0xa   :  { %3003 = vmatpush3.bf16.msra.mxu0 %v3218_v6  ;;  %3215 = vmatpush3.bf16.msra.mxu1 %v3218_v6  ;;  %v3244_v31 = vld [vmem:[%s5192_s0 + $0x200] sm:$0xff]   ;;  %v3245_v32 = vld [vmem:[%s5192_s0 + $0x68] sm:$0xff]   ;;  %v3247_v34 = vld [vmem:[%s5192_s0 + $0x70] sm:$0xff]  }
   0xb   :  { %v3246_v33 = vld [vmem:[%s5192_s0 + $0x208] sm:$0xff]   ;;  %v3248_v35 = vld [vmem:[%s5192_s0 + $0x210] sm:$0xff]   ;;  %v3249_v36 = vld [vmem:[%s5192_s0 + $0x78] sm:$0xff]  }
   0xc   :  { %v3250_v37 = vld [vmem:[%s5192_s0 + $0x218] sm:$0xff]   ;;  %v3251_v38 = vld [vmem:[%s5192_s0 + $0x80] sm:$0xff]   ;;  %v3253_v40 = vld [vmem:[%s5192_s0 + $0x88] sm:$0xff]  }
   0xd   :  { %3005 = vmatmul.mubr.msk.bf16.vlgmr.msra.gmra.mxu0 %vm765_vm2, %v3221_v8  ;;  %3109 = vmatmul.mubr.msk.bf16.vlgmr.msra.gmra.mxu1 %vm765_vm2, %v3222_v9  ;;  %v3252_v39 = vld [vmem:[%s5192_s0 + $0x220] sm:$0xff]   ;;  %v3254_v41 = vld [vmem:[%s5192_s0 + $0x228] sm:$0xff]   ;;  %v3255_v42 = vld [vmem:[%s5192_s0 + $0x90] sm:$0xff]  }
   0xe   :  { %3008 = vmatprep.mubr.msk.bf16.mxu0 %vm765_vm2, %v3223_v10  ;;  %3112 = vmatprep.mubr.msk.bf16.mxu1 %vm765_vm2, %v3224_v11  ;;  %v3256_v43 = vld [vmem:[%s5192_s0 + $0x230] sm:$0xff]   ;;  %v3257_v44 = vld [vmem:[%s5192_s0 + $0x98] sm:$0xff]   ;;  %v3259_v46 = vld [vmem:[%s5192_s0 + $0xa0] sm:$0xff]  }
   0xf   :  { %v3258_v45 = vld [vmem:[%s5192_s0 + $0x238] sm:$0xff]   ;;  %v3260_v47 = vld [vmem:[%s5192_s0 + $0x240] sm:$0xff]   ;;  %v3261_v48 = vld [vmem:[%s5192_s0 + $0xa8] sm:$0xff]  }
  0x10   :  { %v3262_v49 = vld [vmem:[%s5192_s0 + $0x248] sm:$0xff]   ;;  %v3263_v50 = vld [vmem:[%s5192_s0 + $0xb0] sm:$0xff]   ;;  %v3265_v52 = vld [vmem:[%s5192_s0 + $0xb8] sm:$0xff]  }
  0x11   :  { %v3264_v51 = vld [vmem:[%s5192_s0 + $0x250] sm:$0xff]   ;;  %v3266_v53 = vld [vmem:[%s5192_s0 + $0x258] sm:$0xff]   ;;  %v3267_v54 = vld [vmem:[%s5192_s0 + $0xc0] sm:$0xff]  }
  0x12   :  { %v3268_v55 = vld [vmem:[%s5192_s0 + $0x260] sm:$0xff]   ;;  %v3269_v56 = vld [vmem:[%s5192_s0 + $0xc8] sm:$0xff]   ;;  %v3271_v58 = vld [vmem:[%s5192_s0 + $0xd0] sm:$0xff]  }
  0x13   :  { %v3270_v57 = vld [vmem:[%s5192_s0 + $0x268] sm:$0xff]   ;;  %v3272_v59 = vld [vmem:[%s5192_s0 + $0x270] sm:$0xff]   ;;  %v3273_v60 = vld [vmem:[%s5192_s0 + $0xd8] sm:$0xff]  }
  0x14   :  { %v3274_v61 = vld [vmem:[%s5192_s0 + $0x278] sm:$0xff]   ;;  %v3275_v62 = vld [vmem:[%s5192_s0 + $0xe0] sm:$0xff]   ;;  %v3277_v0 = vld [vmem:[%s5192_s0 + $0xe8] sm:$0xff]  }
  0x15   :  { %3009 = vmatmul.mubr.msk.bf16.gmra.mxu0 %vm765_vm2, %v3225_v12  ;;  %3113 = vmatmul.mubr.msk.bf16.gmra.mxu1 %vm765_vm2, %v3226_v13  ;;  %v3276_v63 = vld [vmem:[%s5192_s0 + $0x280] sm:$0xff]   ;;  %v3278_v1 = vld [vmem:[%s5192_s0 + $0x288] sm:$0xff]   ;;  %v3279_v2 = vld [vmem:[%s5192_s0 + $0xf0] sm:$0xff]  }
  0x16   :  { %3012 = vmatprep.mubr.msk.bf16.mxu0 %vm765_vm2, %v3227_v14  ;;  %3116 = vmatprep.mubr.msk.bf16.mxu1 %vm765_vm2, %v3228_v15  ;;  %v3280_v3 = vld [vmem:[%s5192_s0 + $0x290] sm:$0xff]   ;;  %v3281_v4 = vld [vmem:[%s5192_s0 + $0xf8] sm:$0xff]   ;;  %v3283_v6 = vld [vmem:[%s5192_s0 + $0x100] sm:$0xff]  }
  0x17   :  { %v3282_v5 = vld [vmem:[%s5192_s0 + $0x298] sm:$0xff]   ;;  %v3284_v7 = vld [vmem:[%s5192_s0 + $0x2a0] sm:$0xff]   ;;  %v3285_v8 = vld [vmem:[%s5192_s0 + $0x108] sm:$0xff]  }
  0x18   :  { %v3286_v9 = vld [vmem:[%s5192_s0 + $0x2a8] sm:$0xff]   ;;  %v3287_v10 = vld [vmem:[%s5192_s0 + $0x110] sm:$0xff]   ;;  %v3289_v12 = vld [vmem:[%s5192_s0 + $0x118] sm:$0xff]  }
  0x19   :  { %v3288_v11 = vld [vmem:[%s5192_s0 + $0x2b0] sm:$0xff]   ;;  %v3290_v13 = vld [vmem:[%s5192_s0 + $0x2b8] sm:$0xff]   ;;  %v3291_v14 = vld [vmem:[%s5192_s0 + $0x120] sm:$0xff]  }
  0x1a   :  { %v3292_v15 = vld [vmem:[%s5192_s0 + $0x2c0] sm:$0xff]  }
  0x1d   :  { %3013 = vmatmul.mubr.msk.bf16.gmra.mxu0 %vm765_vm2, %v3229_v16  ;;  %3117 = vmatmul.mubr.msk.bf16.gmra.mxu1 %vm765_vm2, %v3230_v17  ;;  %v3293_v16 = vld [vmem:[%s5192_s0 + $0x128] sm:$0xff]  }
  0x1e   :  { %3016 = vmatprep.mubr.msk.bf16.mxu0 %vm765_vm2, %v3231_v18  ;;  %3120 = vmatprep.mubr.msk.bf16.mxu1 %vm765_vm2, %v3232_v19  ;;  %v3294_v17 = vld [vmem:[%s5192_s0 + $0x2c8] sm:$0xff]   ;;  %v3295_v18 = vld [vmem:[%s5192_s0 + $0x130] sm:$0xff]  }
  0x1f   :  { %v3296_v19 = vld [vmem:[%s5192_s0 + $0x2d0] sm:$0xff]  }
  0x25   :  { %3017 = vmatmul.mubr.msk.bf16.gmra.mxu0 %vm765_vm2, %v3233_v20  ;;  %3121 = vmatmul.mubr.msk.bf16.gmra.mxu1 %vm765_vm2, %v3234_v21  ;;  %v3297_v20 = vld [vmem:[%s5192_s0 + $0x138] sm:$0xff]  }
  0x26   :  { %3020 = vmatprep.mubr.msk.bf16.mxu0 %vm765_vm2, %v3235_v22  ;;  %3124 = vmatprep.mubr.msk.bf16.mxu1 %vm765_vm2, %v3236_v23  ;;  %v3298_v21 = vld [vmem:[%s5192_s0 + $0x2d8] sm:$0xff]   ;;  %v3299_v22 = vld [vmem:[%s5192_s0 + $0x140] sm:$0xff]  }
  0x27   :  { %v3300_v23 = vld [vmem:[%s5192_s0 + $0x2e0] sm:$0xff]  }
  0x2d   :  { %3021 = vmatmul.mubr.msk.bf16.gmra.mxu0 %vm765_vm2, %v3237_v24  ;;  %3125 = vmatmul.mubr.msk.bf16.gmra.mxu1 %vm765_vm2, %v3238_v25  ;;  %v3301_v24 = vld [vmem:[%s5192_s0 + $0x148] sm:$0xff]  }
  0x2e   :  { %3024 = vmatprep.mubr.msk.bf16.mxu0 %vm765_vm2, %v3239_v26  ;;  %3128 = vmatprep.mubr.msk.bf16.mxu1 %vm765_vm2, %v3240_v27  ;;  %v3302_v25 = vld [vmem:[%s5192_s0 + $0x2e8] sm:$0xff]   ;;  %v3303_v26 = vld [vmem:[%s5192_s0 + $0x150] sm:$0xff]  }
  0x2f   :  { %v3304_v27 = vld [vmem:[%s5192_s0 + $0x2f0] sm:$0xff]  }
  0x35   :  { %3025 = vmatmul.mubr.msk.bf16.gmra.mxu0 %vm765_vm2, %v3241_v28  ;;  %3129 = vmatmul.mubr.msk.bf16.gmra.mxu1 %vm765_vm2, %v3242_v29  ;;  %v3305_v28 = vld [vmem:[%s5192_s0 + $0x158] sm:$0xff]  }
  0x36   :  { %3028 = vmatprep.mubr.msk.bf16.mxu0 %vm765_vm2, %v3243_v30  ;;  %3132 = vmatprep.mubr.msk.bf16.mxu1 %vm765_vm2, %v3244_v31  ;;  %v3306_v29 = vld [vmem:[%s5192_s0 + $0x2f8] sm:$0xff]   ;;  %v3307_v30 = vld [vmem:[%s5192_s0 + $0x160] sm:$0xff]  }
  0x37   :  { %v3308_v31 = vld [vmem:[%s5192_s0 + $0x300] sm:$0xff]  }
  0x3d   :  { %3029 = vmatmul.mubr.msk.bf16.gmra.mxu0 %vm765_vm2, %v3245_v32  ;;  %3133 = vmatmul.mubr.msk.bf16.gmra.mxu1 %vm765_vm2, %v3246_v33  ;;  %v3309_v32 = vld [vmem:[%s5192_s0 + $0x168] sm:$0xff]  }
  0x3e   :  { %3032 = vmatprep.mubr.msk.bf16.mxu0 %vm765_vm2, %v3247_v34  ;;  %3136 = vmatprep.mubr.msk.bf16.mxu1 %vm765_vm2, %v3248_v35  ;;  %v3310_v33 = vld [vmem:[%s5192_s0 + $0x308] sm:$0xff]   ;;  %v3311_v34 = vld [vmem:[%s5192_s0 + $0x170] sm:$0xff]  }
  0x3f   :  { %v3312_v35 = vld [vmem:[%s5192_s0 + $0x310] sm:$0xff]  }
  0x45   :  { %3033 = vmatmul.mubr.msk.bf16.gmra.mxu0 %vm765_vm2, %v3249_v36  ;;  %3137 = vmatmul.mubr.msk.bf16.gmra.mxu1 %vm765_vm2, %v3250_v37  ;;  %v3313_v36 = vld [vmem:[%s5192_s0 + $0x178] sm:$0xff]  }
  0x46   :  { %3036 = vmatprep.mubr.msk.bf16.mxu0 %vm765_vm2, %v3251_v38  ;;  %3140 = vmatprep.mubr.msk.bf16.mxu1 %vm765_vm2, %v3252_v39  ;;  %v3314_v37 = vld [vmem:[%s5192_s0 + $0x318] sm:$0xff]   ;;  %v3315_v38 = vld [vmem:[%s5192_s0 + $0x180] sm:$0xff]  }
  0x47   :  { %v3316_v39 = vld [vmem:[%s5192_s0 + $0x320] sm:$0xff]  }
  0x4d   :  { %3037 = vmatmul.mubr.msk.bf16.gmra.mxu0 %vm765_vm2, %v3253_v40  ;;  %3141 = vmatmul.mubr.msk.bf16.gmra.mxu1 %vm765_vm2, %v3254_v41  ;;  %v3317_v40 = vld [vmem:[%s5192_s0 + $0x188] sm:$0xff]  }
  0x4e   :  { %3040 = vmatprep.mubr.msk.bf16.mxu0 %vm765_vm2, %v3255_v42  ;;  %3144 = vmatprep.mubr.msk.bf16.mxu1 %vm765_vm2, %v3256_v43  ;;  %v3318_v41 = vld [vmem:[%s5192_s0 + $0x328] sm:$0xff]   ;;  %v3319_v42 = vld [vmem:[%s5192_s0 + $0x190] sm:$0xff]  }
  0x4f   :  { %v3320_v43 = vld [vmem:[%s5192_s0 + $0x330] sm:$0xff]  }
  0x55   :  { %3041 = vmatmul.mubr.msk.bf16.gmra.mxu0 %vm765_vm2, %v3257_v44  ;;  %3145 = vmatmul.mubr.msk.bf16.gmra.mxu1 %vm765_vm2, %v3258_v45  ;;  %v4174_v44 = vld [vmem:[%s5193_s2] ss:$0 sm:$0xff] }
  0x56   :  { %3044 = vmatprep.mubr.msk.bf16.mxu0 %vm765_vm2, %v3259_v46  ;;  %3148 = vmatprep.mubr.msk.bf16.mxu1 %vm765_vm2, %v3260_v47 }
  0x5d   :  { %3045 = vmatmul.mubr.msk.bf16.gmra.mxu0 %vm765_vm2, %v3261_v48  ;;  %3149 = vmatmul.mubr.msk.bf16.gmra.mxu1 %vm765_vm2, %v3262_v49 }
  0x5e   :  { %3048 = vmatprep.mubr.msk.bf16.mxu0 %vm765_vm2, %v3263_v50  ;;  %3152 = vmatprep.mubr.msk.bf16.mxu1 %vm765_vm2, %v3264_v51 }
  0x65   :  { %3049 = vmatmul.mubr.msk.bf16.gmra.mxu0 %vm765_vm2, %v3265_v52  ;;  %3153 = vmatmul.mubr.msk.bf16.gmra.mxu1 %vm765_vm2, %v3266_v53 }
  0x66   :  { %3052 = vmatprep.mubr.msk.bf16.mxu0 %vm765_vm2, %v3267_v54  ;;  %3156 = vmatprep.mubr.msk.bf16.mxu1 %vm765_vm2, %v3268_v55  ;;  %v3321_v55 = vld [vmem:[%s5192_s0 + $0x198] sm:$0xff]  }
  0x6d   :  { %3053 = vmatmul.mubr.msk.bf16.gmra.mxu0 %vm765_vm2, %v3269_v56  ;;  %3157 = vmatmul.mubr.msk.bf16.gmra.mxu1 %vm765_vm2, %v3270_v57  ;;  %v3322_v56 = vld [vmem:[%s5192_s0 + $0x338] sm:$0xff]  }
  0x6e   :  { %3056 = vmatprep.mubr.msk.bf16.mxu0 %vm765_vm2, %v3271_v58  ;;  %3160 = vmatprep.mubr.msk.bf16.mxu1 %vm765_vm2, %v3272_v59 }
  0x75   :  { %3057 = vmatmul.mubr.msk.bf16.gmra.mxu0 %vm765_vm2, %v3273_v60  ;;  %3161 = vmatmul.mubr.msk.bf16.gmra.mxu1 %vm765_vm2, %v3274_v61 }
  0x76   :  { %3060 = vmatprep.mubr.msk.bf16.mxu0 %vm765_vm2, %v3275_v62  ;;  %3164 = vmatprep.mubr.msk.bf16.mxu1 %vm765_vm2, %v3276_v63 }
  0x7d   :  { %3061 = vmatmul.mubr.msk.bf16.gmra.mxu0 %vm765_vm2, %v3277_v0  ;;  %3165 = vmatmul.mubr.msk.bf16.gmra.mxu1 %vm765_vm2, %v3278_v1 }
  0x7e   :  { %3064 = vmatprep.mubr.msk.bf16.mxu0 %vm765_vm2, %v3279_v2  ;;  %3168 = vmatprep.mubr.msk.bf16.mxu1 %vm765_vm2, %v3280_v3 }
  0x85   :  { %3065 = vmatmul.mubr.msk.bf16.gmra.mxu0 %vm765_vm2, %v3281_v4  ;;  %3169 = vmatmul.mubr.msk.bf16.gmra.mxu1 %vm765_vm2, %v3282_v5 }
  0x86   :  { %3068 = vmatprep.mubr.msk.bf16.mxu0 %vm765_vm2, %v3283_v6  ;;  %3172 = vmatprep.mubr.msk.bf16.mxu1 %vm765_vm2, %v3284_v7 }
  0x8d   :  { %3069 = vmatmul.mubr.msk.bf16.gmra.mxu0 %vm765_vm2, %v3285_v8  ;;  %3173 = vmatmul.mubr.msk.bf16.gmra.mxu1 %vm765_vm2, %v3286_v9 }
  0x8e   :  { %3072 = vmatprep.mubr.msk.bf16.mxu0 %vm765_vm2, %v3287_v10  ;;  %3176 = vmatprep.mubr.msk.bf16.mxu1 %vm765_vm2, %v3288_v11 }
  0x95   :  { %3073 = vmatmul.mubr.msk.bf16.gmra.mxu0 %vm765_vm2, %v3289_v12  ;;  %3177 = vmatmul.mubr.msk.bf16.gmra.mxu1 %vm765_vm2, %v3290_v13 }
  0x96   :  { %3076 = vmatprep.mubr.msk.bf16.mxu0 %vm765_vm2, %v3291_v14  ;;  %3180 = vmatprep.mubr.msk.bf16.mxu1 %vm765_vm2, %v3292_v15 }
  0x9d   :  { %3077 = vmatmul.mubr.msk.bf16.gmra.mxu0 %vm765_vm2, %v3293_v16  ;;  %3181 = vmatmul.mubr.msk.bf16.gmra.mxu1 %vm765_vm2, %v3294_v17 }
  0x9e   :  { %3080 = vmatprep.mubr.msk.bf16.mxu0 %vm765_vm2, %v3295_v18  ;;  %3184 = vmatprep.mubr.msk.bf16.mxu1 %vm765_vm2, %v3296_v19 }
  0xa5   :  { %3081 = vmatmul.mubr.msk.bf16.gmra.mxu0 %vm765_vm2, %v3297_v20  ;;  %3185 = vmatmul.mubr.msk.bf16.gmra.mxu1 %vm765_vm2, %v3298_v21 }
  0xa6   :  { %3084 = vmatprep.mubr.msk.bf16.mxu0 %vm765_vm2, %v3299_v22  ;;  %3188 = vmatprep.mubr.msk.bf16.mxu1 %vm765_vm2, %v3300_v23 }
  0xad   :  { %3085 = vmatmul.mubr.msk.bf16.gmra.mxu0 %vm765_vm2, %v3301_v24  ;;  %3189 = vmatmul.mubr.msk.bf16.gmra.mxu1 %vm765_vm2, %v3302_v25 }
  0xae   :  { %3088 = vmatprep.mubr.msk.bf16.mxu0 %vm765_vm2, %v3303_v26  ;;  %3192 = vmatprep.mubr.msk.bf16.mxu1 %vm765_vm2, %v3304_v27 }
  0xb5   :  { %3089 = vmatmul.mubr.msk.bf16.gmra.mxu0 %vm765_vm2, %v3305_v28  ;;  %3193 = vmatmul.mubr.msk.bf16.gmra.mxu1 %vm765_vm2, %v3306_v29 }
  0xb6   :  { %3092 = vmatprep.mubr.msk.bf16.mxu0 %vm765_vm2, %v3307_v30  ;;  %3196 = vmatprep.mubr.msk.bf16.mxu1 %vm765_vm2, %v3308_v31 }
  0xbd   :  { %3093 = vmatmul.mubr.msk.bf16.gmra.mxu0 %vm765_vm2, %v3309_v32  ;;  %3197 = vmatmul.mubr.msk.bf16.gmra.mxu1 %vm765_vm2, %v3310_v33 }
  0xbe   :  { %3096 = vmatprep.mubr.msk.bf16.mxu0 %vm765_vm2, %v3311_v34  ;;  %3200 = vmatprep.mubr.msk.bf16.mxu1 %vm765_vm2, %v3312_v35 }
  0xc5   :  { %3097 = vmatmul.mubr.msk.bf16.gmra.mxu0 %vm765_vm2, %v3313_v36  ;;  %3201 = vmatmul.mubr.msk.bf16.gmra.mxu1 %vm765_vm2, %v3314_v37 }
  0xc6   :  { %3100 = vmatprep.mubr.msk.bf16.mxu0 %vm765_vm2, %v3315_v38  ;;  %3204 = vmatprep.mubr.msk.bf16.mxu1 %vm765_vm2, %v3316_v39 }
  0xcd   :  { %v3006_v45 = vpop.f32.mrf.mxu0  ;;  %3101 = vmatmul.mubr.msk.bf16.gmra.mxu0 %vm765_vm2, %v3317_v40  ;;  %v3110_v46 = vpop.f32.mrf.mxu1  ;;  %3205 = vmatmul.mubr.msk.bf16.gmra.mxu1 %vm765_vm2, %v3318_v41 }
  0xce   :  { %v1128_v47 = vadd.f32 %v3006_v45, %v4174_v44  ;;  %v1544_v48 = vadd.f32 %v3110_v46, %v4174_v44  ;;  %3104 = vmatprep.mubr.msk.bf16.mxu0 %vm765_vm2, %v3319_v42  ;;  %3208 = vmatprep.mubr.msk.bf16.mxu1 %vm765_vm2, %v3320_v43 }
  0xcf   :  { %v1119_v49 = vpop.f32.mrf.mxu0  ;;  %v1535_v50 = vpop.f32.mrf.mxu1 }
  0xd0   :  { %3323 = vtanh.f32 %v1128_v47  ;;  %v1120_v51 = vadd.f32 %v4174_v44, %v1119_v49  ;;  %v1536_v52 = vadd.f32 %v4174_v44, %v1535_v50 }
  0xd1   :  { %3325 = vtanh.f32 %v1544_v48  ;;  %v3007_v53 = vpop.f32.mrf.mxu0  ;;  %v3111_v54 = vpop.f32.mrf.mxu1 }
  0xd2   :  { %3327 = vtanh.f32 %v1120_v51  ;;  %v1131_v57 = vadd.f32 %v3007_v53, %v4174_v44  ;;  %v1547_v58 = vadd.f32 %v3111_v54, %v4174_v44 }
  0xd3   :  { %3329 = vtanh.f32 %v1536_v52  ;;  %v1122_v59 = vpop.f32.mrf.mxu0  ;;  %v1538_v60 = vpop.f32.mrf.mxu1 }
  0xd4   :  { %3331 = vtanh.f32 %v1131_v57  ;;  %v1123_v61 = vadd.f32 %v4174_v44, %v1122_v59  ;;  %v1539_v62 = vadd.f32 %v4174_v44, %v1538_v60 }
  0xd5   :  { %3333 = vtanh.f32 %v1547_v58  ;;  %v3010_v63 = vpop.f32.mrf.mxu0  ;;  %3105 = vmatmul.mubr.msk.bf16.gmra.mxu0 %vm765_vm2, %v3321_v55  ;;  %v3114_v0 = vpop.f32.mrf.mxu1  ;;  %3209 = vmatmul.mubr.msk.bf16.gmra.mxu1 %vm765_vm2, %v3322_v56 }
  0xd6   :  { %3335 = vtanh.f32 %v1123_v61  ;;  %v1144_v1 = vadd.f32 %v3010_v63, %v4174_v44  ;;  %v1560_v2 = vadd.f32 %v3114_v0, %v4174_v44 }
  0xd7   :  { %3337 = vtanh.f32 %v1539_v62  ;;  %v1135_v3 = vpop.f32.mrf.mxu0  ;;  %v1551_v4 = vpop.f32.mrf.mxu1 }
  0xd8   :  { %3339 = vtanh.f32 %v1144_v1  ;;  %v1136_v5 = vadd.f32 %v4174_v44, %v1135_v3  ;;  %v1552_v6 = vadd.f32 %v4174_v44, %v1551_v4 }
  0xd9   :  { %3341 = vtanh.f32 %v1560_v2  ;;  %v3011_v7 = vpop.f32.mrf.mxu0  ;;  %v3115_v8 = vpop.f32.mrf.mxu1 }
  0xda   :  { %3343 = vtanh.f32 %v1136_v5  ;;  %v1147_v9 = vadd.f32 %v3011_v7, %v4174_v44  ;;  %v1563_v10 = vadd.f32 %v3115_v8, %v4174_v44 }
  0xdb   :  { %3345 = vtanh.f32 %v1552_v6  ;;  %v1138_v11 = vpop.f32.mrf.mxu0  ;;  %v1554_v12 = vpop.f32.mrf.mxu1 }
  0xdc   :  { %3347 = vtanh.f32 %v1147_v9  ;;  %v1139_v13 = vadd.f32 %v4174_v44, %v1138_v11  ;;  %v1555_v14 = vadd.f32 %v4174_v44, %v1554_v12 }
  0xdd   :  { %v4204_v15 = vpop.eup %3323  ;;  %3349 = vtanh.f32 %v1563_v10  ;;  %v3014_v16 = vpop.f32.mrf.mxu0 }
  0xde   :  { %v3118_v17 = vpop.f32.mrf.mxu1  ;;  %v4206_v18 = vpop.eup %3325  ;;  %3351 = vtanh.f32 %v1139_v13  ;;  %v1160_v19 = vadd.f32 %v3014_v16, %v4174_v44 }
  0xdf   :  { %v1576_v20 = vadd.f32 %v3118_v17, %v4174_v44  ;;  %v4210_v21 = vpop.eup %3327  ;;  %3353 = vtanh.f32 %v1555_v14  ;;  %v1151_v22 = vpop.f32.mrf.mxu0 }
  0xe0   :  { %v1567_v23 = vpop.f32.mrf.mxu1  ;;  %v4212_v24 = vpop.eup %3329  ;;  %3355 = vtanh.f32 %v1160_v19  ;;  %v1152_v25 = vadd.f32 %v4174_v44, %v1151_v22 }
  0xe1   :  { %v1568_v26 = vadd.f32 %v4174_v44, %v1567_v23  ;;  %v4216_v27 = vpop.eup %3331  ;;  %3357 = vtanh.f32 %v1576_v20  ;;  %v3015_v28 = vpop.f32.mrf.mxu0 }
  0xe2   :  { %v3119_v29 = vpop.f32.mrf.mxu1  ;;  %v4218_v30 = vpop.eup %3333  ;;  %3359 = vtanh.f32 %v1152_v25  ;;  %v1163_v31 = vadd.f32 %v3015_v28, %v4174_v44 }
  0xe3   :  { %v1579_v32 = vadd.f32 %v3119_v29, %v4174_v44  ;;  %v4222_v33 = vpop.eup %3335  ;;  %3361 = vtanh.f32 %v1568_v26  ;;  %v1154_v34 = vpop.f32.mrf.mxu0 }
  0xe4   :  { %v1570_v35 = vpop.f32.mrf.mxu1  ;;  %v4224_v36 = vpop.eup %3337  ;;  %3363 = vtanh.f32 %v1163_v31  ;;  %v1155_v37 = vadd.f32 %v4174_v44, %v1154_v34 }
  0xe5   :  { %v1571_v38 = vadd.f32 %v4174_v44, %v1570_v35  ;;  %v4228_v39 = vpop.eup %3339  ;;  %3365 = vtanh.f32 %v1579_v32  ;;  %v3018_v40 = vpop.f32.mrf.mxu0 }
  0xe6   :  { %v3122_v41 = vpop.f32.mrf.mxu1  ;;  %v4230_v42 = vpop.eup %3341  ;;  %3367 = vtanh.f32 %v1155_v37  ;;  %v1176_v43 = vadd.f32 %v3018_v40, %v4174_v44 }
  0xe7   :  { %v1592_v45 = vadd.f32 %v3122_v41, %v4174_v44  ;;  %v4234_v46 = vpop.eup %3343  ;;  %3369 = vtanh.f32 %v1571_v38  ;;  %v1167_v47 = vpop.f32.mrf.mxu0 }
  0xe8   :  { %v1583_v48 = vpop.f32.mrf.mxu1  ;;  %v4236_v49 = vpop.eup %3345  ;;  %3371 = vtanh.f32 %v1176_v43  ;;  %v1168_v50 = vadd.f32 %v4174_v44, %v1167_v47 }
  0xe9   :  { %v1584_v51 = vadd.f32 %v4174_v44, %v1583_v48  ;;  %v4240_v52 = vpop.eup %3347  ;;  %3373 = vtanh.f32 %v1592_v45  ;;  %v3019_v53 = vpop.f32.mrf.mxu0 }
  0xea   :  { %v3123_v54 = vpop.f32.mrf.mxu1  ;;  %v4242_v55 = vpop.eup %3349  ;;  %3375 = vtanh.f32 %v1168_v50  ;;  %v1179_v56 = vadd.f32 %v3019_v53, %v4174_v44 }
  0xeb   :  { %v1595_v57 = vadd.f32 %v3123_v54, %v4174_v44  ;;  %v4246_v58 = vpop.eup %3351  ;;  %3377 = vtanh.f32 %v1584_v51  ;;  %v1170_v59 = vpop.f32.mrf.mxu0 }
  0xec   :  { %v1586_v60 = vpop.f32.mrf.mxu1  ;;  %v4248_v61 = vpop.eup %3353  ;;  %3379 = vtanh.f32 %v1179_v56  ;;  %v1171_v62 = vadd.f32 %v4174_v44, %v1170_v59 }
  0xed   :  { %v1587_v63 = vadd.f32 %v4174_v44, %v1586_v60  ;;  %v4252_v0 = vpop.eup %3355  ;;  %3381 = vtanh.f32 %v1595_v57  ;;  %v3022_v1 = vpop.f32.mrf.mxu0 }
  0xee   :  { %v3126_v2 = vpop.f32.mrf.mxu1  ;;  %v4254_v3 = vpop.eup %3357  ;;  %3383 = vtanh.f32 %v1171_v62  ;;  %v1192_v4 = vadd.f32 %v3022_v1, %v4174_v44 }
  0xef   :  { %v1608_v5 = vadd.f32 %v3126_v2, %v4174_v44  ;;  %v4258_v6 = vpop.eup %3359  ;;  %3385 = vtanh.f32 %v1587_v63  ;;  %v1183_v7 = vpop.f32.mrf.mxu0 }
  0xf0   :  { %v1599_v8 = vpop.f32.mrf.mxu1  ;;  %v4260_v9 = vpop.eup %3361  ;;  %3387 = vtanh.f32 %v1192_v4  ;;  %v1184_v10 = vadd.f32 %v4174_v44, %v1183_v7 }
  0xf1   :  { %v1600_v11 = vadd.f32 %v4174_v44, %v1599_v8  ;;  %v4264_v12 = vpop.eup %3363  ;;  %3389 = vtanh.f32 %v1608_v5  ;;  %v3023_v13 = vpop.f32.mrf.mxu0 }
  0xf2   :  { %v3127_v14 = vpop.f32.mrf.mxu1  ;;  %v4266_v16 = vpop.eup %3365  ;;  %3391 = vtanh.f32 %v1184_v10  ;;  %v1195_v17 = vadd.f32 %v3023_v13, %v4174_v44 }
  0xf3   :  { %v1611_v19 = vadd.f32 %v3127_v14, %v4174_v44  ;;  %v4270_v20 = vpop.eup %3367  ;;  %3393 = vtanh.f32 %v1600_v11  ;;  %v1186_v22 = vpop.f32.mrf.mxu0 }
  0xf4   :  { %v1602_v23 = vpop.f32.mrf.mxu1  ;;  %v4272_v25 = vpop.eup %3369  ;;  %3395 = vtanh.f32 %v1195_v17  ;;  %v1187_v26 = vadd.f32 %v4174_v44, %v1186_v22 }
  0xf5   :  { %v1603_v28 = vadd.f32 %v4174_v44, %v1602_v23  ;;  %v4276_v29 = vpop.eup %3371  ;;  %3397 = vtanh.f32 %v1611_v19  ;;  %v3026_v31 = vpop.f32.mrf.mxu0 }
  0xf6   :  { %v3130_v32 = vpop.f32.mrf.mxu1  ;;  %v4278_v34 = vpop.eup %3373  ;;  %3399 = vtanh.f32 %v1187_v26  ;;  %v1208_v35 = vadd.f32 %v3026_v31, %v4174_v44 }
  0xf7   :  { %v1624_v37 = vadd.f32 %v3130_v32, %v4174_v44  ;;  %v4282_v38 = vpop.eup %3375  ;;  %3401 = vtanh.f32 %v1603_v28  ;;  %v1199_v40 = vpop.f32.mrf.mxu0 }
  0xf8   :  { %v1615_v41 = vpop.f32.mrf.mxu1  ;;  %v4284_v43 = vpop.eup %3377  ;;  %3403 = vtanh.f32 %v1208_v35  ;;  %v1200_v45 = vadd.f32 %v4174_v44, %v1199_v40 }
  0xf9   :  { %v1616_v47 = vadd.f32 %v4174_v44, %v1615_v41  ;;  %v4288_v48 = vpop.eup %3379  ;;  %3405 = vtanh.f32 %v1624_v37  ;;  %v3027_v50 = vpop.f32.mrf.mxu0 }
  0xfa   :  { %v3131_v51 = vpop.f32.mrf.mxu1  ;;  %v4290_v53 = vpop.eup %3381  ;;  %3407 = vtanh.f32 %v1200_v45  ;;  %v1211_v54 = vadd.f32 %v3027_v50, %v4174_v44 }
  0xfb   :  { %v1627_v56 = vadd.f32 %v3131_v51, %v4174_v44  ;;  %v4294_v57 = vpop.eup %3383  ;;  %3409 = vtanh.f32 %v1616_v47  ;;  %v1202_v59 = vpop.f32.mrf.mxu0 }
  0xfc   :  { %v1618_v60 = vpop.f32.mrf.mxu1  ;;  %v4296_v62 = vpop.eup %3385  ;;  %3411 = vtanh.f32 %v1211_v54  ;;  %v1203_v63 = vadd.f32 %v4174_v44, %v1202_v59 }
  0xfd   :  { %v1619_v1 = vadd.f32 %v4174_v44, %v1618_v60  ;;  %v4300_v2 = vpop.eup %3387  ;;  %3413 = vtanh.f32 %v1627_v56  ;;  %v3030_v4 = vpop.f32.mrf.mxu0 }
  0xfe   :  { %v3134_v5 = vpop.f32.mrf.mxu1  ;;  %v4302_v7 = vpop.eup %3389  ;;  %3415 = vtanh.f32 %v1203_v63  ;;  %v1224_v8 = vadd.f32 %v3030_v4, %v4174_v44 }
  0xff   :  { %v1640_v10 = vadd.f32 %v3134_v5, %v4174_v44  ;;  %v4306_v11 = vpop.eup %3391  ;;  %3417 = vtanh.f32 %v1619_v1  ;;  %v1215_v13 = vpop.f32.mrf.mxu0 }
 0x100   :  { %v1631_v14 = vpop.f32.mrf.mxu1  ;;  %v4308_v17 = vpop.eup %3393  ;;  %3419 = vtanh.f32 %v1224_v8  ;;  %v1216_v19 = vadd.f32 %v4174_v44, %v1215_v13 }
 0x101   :  { %v1632_v22 = vadd.f32 %v4174_v44, %v1631_v14  ;;  %v4312_v23 = vpop.eup %3395  ;;  %3421 = vtanh.f32 %v1640_v10  ;;  %v3031_v26 = vpop.f32.mrf.mxu0 }
 0x102   :  { %v3135_v28 = vpop.f32.mrf.mxu1  ;;  %v4314_v31 = vpop.eup %3397  ;;  %3423 = vtanh.f32 %v1216_v19  ;;  %v1227_v32 = vadd.f32 %v3031_v26, %v4174_v44 }
 0x103   :  { %v1643_v35 = vadd.f32 %v3135_v28, %v4174_v44  ;;  %v4318_v37 = vpop.eup %3399  ;;  %3425 = vtanh.f32 %v1632_v22  ;;  %v1218_v40 = vpop.f32.mrf.mxu0 }
 0x104   :  { %v1634_v41 = vpop.f32.mrf.mxu1  ;;  %v4320_v45 = vpop.eup %3401  ;;  %3427 = vtanh.f32 %v1227_v32  ;;  %v1219_v47 = vadd.f32 %v4174_v44, %v1218_v40 }
 0x105   :  { %v1635_v50 = vadd.f32 %v4174_v44, %v1634_v41  ;;  %v4324_v51 = vpop.eup %3403  ;;  %3429 = vtanh.f32 %v1643_v35  ;;  %v3034_v54 = vpop.f32.mrf.mxu0 }
 0x106   :  { %v3138_v56 = vpop.f32.mrf.mxu1  ;;  %v4326_v59 = vpop.eup %3405  ;;  %3431 = vtanh.f32 %v1219_v47  ;;  %v1240_v60 = vadd.f32 %v3034_v54, %v4174_v44 }
 0x107   :  { %v1656_v63 = vadd.f32 %v3138_v56, %v4174_v44  ;;  %v4330_v1 = vpop.eup %3407  ;;  %3433 = vtanh.f32 %v1635_v50  ;;  %v1231_v4 = vpop.f32.mrf.mxu0 }
 0x108   :  { %v1647_v5 = vpop.f32.mrf.mxu1  ;;  %v4332_v8 = vpop.eup %3409  ;;  %3435 = vtanh.f32 %v1240_v60  ;;  %v1232_v10 = vadd.f32 %v4174_v44, %v1231_v4 }
 0x109   :  { %v1648_v13 = vadd.f32 %v4174_v44, %v1647_v5  ;;  %v4336_v14 = vpop.eup %3411  ;;  %3437 = vtanh.f32 %v1656_v63  ;;  %v3035_v19 = vpop.f32.mrf.mxu0 }
 0x10a   :  { %v3139_v22 = vpop.f32.mrf.mxu1  ;;  %v4338_v26 = vpop.eup %3413  ;;  %3439 = vtanh.f32 %v1232_v10  ;;  %v1243_v28 = vadd.f32 %v3035_v19, %v4174_v44 }
 0x10b   :  { %v1659_v32 = vadd.f32 %v3139_v22, %v4174_v44  ;;  %v4342_v35 = vpop.eup %3415  ;;  %3441 = vtanh.f32 %v1648_v13  ;;  %v1234_v40 = vpop.f32.mrf.mxu0 }
 0x10c   :  { %v1650_v41 = vpop.f32.mrf.mxu1  ;;  %v4344_v47 = vpop.eup %3417  ;;  %3443 = vtanh.f32 %v1243_v28  ;;  %v1235_v50 = vadd.f32 %v4174_v44, %v1234_v40 }
 0x10d   :  { %v1651_v54 = vadd.f32 %v4174_v44, %v1650_v41  ;;  %v3420_v56 = vpop.eup %3419  ;;  %3445 = vtanh.f32 %v1659_v32  ;;  %v3038_v60 = vpop.f32.mrf.mxu0 }
 0x10e   :  { %v3142_v63 = vpop.f32.mrf.mxu1  ;;  %v3422_v4 = vpop.eup %3421  ;;  %v4349_v5 = vadd.f32 %v3420_v56, %v4210_v21  ;;  %3447 = vtanh.f32 %v1235_v50  ;;  %v1256_v10 = vadd.f32 %v3038_v60, %v4174_v44 }
 0x10f   :  { %v1672_v13 = vadd.f32 %v3142_v63, %v4174_v44  ;;  %v4353_v19 = vpop.eup %3423  ;;  %v4356_v22 = vadd.f32 %v3422_v4, %v4212_v24  ;;  %3449 = vtanh.f32 %v1651_v54  ;;  %v1247_v28 = vpop.f32.mrf.mxu0 }
 0x110   :  { %5195 = vst [vmem:[#allocation2_spill] sm:$0xff] %v4349_v5  ;;  %v1663_v40 = vpop.f32.mrf.mxu1  ;;  %v4358_v32 = vpop.eup %3425  ;;  %3451 = vtanh.f32 %v1256_v10  ;;  %v1248_v41 = vadd.f32 %v4174_v44, %v1247_v28 }
 0x111   :  { %5196 = vst [vmem:[#allocation3_spill] sm:$0xff] %v4356_v22  ;;  %v1664_v21 = vadd.f32 %v4174_v44, %v1663_v40  ;;  %v3428_v50 = vpop.eup %3427  ;;  %3453 = vtanh.f32 %v1672_v13  ;;  %v3039_v56 = vpop.f32.mrf.mxu0 }
 0x112   :  { %v3143_v60 = vpop.f32.mrf.mxu1  ;;  %v3430_v63 = vpop.eup %3429  ;;  %v4363_v5 = vadd.f32 %v3428_v50, %v4222_v33  ;;  %3455 = vtanh.f32 %v1248_v41  ;;  %v1259_v24 = vadd.f32 %v3039_v56, %v4174_v44 }
 0x113   :  { %v1675_v54 = vadd.f32 %v3143_v60, %v4174_v44  ;;  %v4367_v4 = vpop.eup %3431  ;;  %v4370_v10 = vadd.f32 %v3430_v63, %v4224_v36  ;;  %3457 = vtanh.f32 %v1664_v21  ;;  %v1250_v28 = vpop.f32.mrf.mxu0 }
 0x114   :  { %5197 = vst [vmem:[#allocation4_spill] sm:$0xff] %v4363_v5  ;;  %v1666_v40 = vpop.f32.mrf.mxu1  ;;  %v4372_v13 = vpop.eup %3433  ;;  %3459 = vtanh.f32 %v1259_v24  ;;  %v1251_v22 = vadd.f32 %v4174_v44, %v1250_v28 }
 0x115   :  { %5198 = vst [vmem:[#allocation5_spill] sm:$0xff] %v4370_v10  ;;  %v1667_v33 = vadd.f32 %v4174_v44, %v1666_v40  ;;  %v3436_v41 = vpop.eup %3435  ;;  %3461 = vtanh.f32 %v1675_v54  ;;  %v3042_v50 = vpop.f32.mrf.mxu0 }
 0x116   :  { %v3146_v56 = vpop.f32.mrf.mxu1  ;;  %v3438_v60 = vpop.eup %3437  ;;  %v4377_v5 = vadd.f32 %v3436_v41, %v4234_v46  ;;  %3463 = vtanh.f32 %v1251_v22  ;;  %v1272_v36 = vadd.f32 %v3042_v50, %v4174_v44 }
 0x117   :  { %v1688_v21 = vadd.f32 %v3146_v56, %v4174_v44  ;;  %v3440_v63 = vpop.eup %3439  ;;  %v4382_v24 = vadd.f32 %v3438_v60, %v4236_v49  ;;  %3465 = vtanh.f32 %v1667_v33  ;;  %v1263_v28 = vpop.f32.mrf.mxu0 }
 0x118   :  { %v1679_v40 = vpop.f32.mrf.mxu1  ;;  %v3442_v10 = vpop.eup %3441  ;;  %v4385_v54 = vadd.f32 %v3440_v63, %v4204_v15  ;;  %3467 = vtanh.f32 %v1272_v36  ;;  %v1264_v46 = vadd.f32 %v4174_v44, %v1263_v28 }
 0x119   :  { %v1680_v22 = vadd.f32 %v4174_v44, %v1679_v40  ;;  %v3444_v41 = vpop.eup %3443  ;;  %v4390_v50 = vadd.f32 %v3442_v10, %v4206_v18  ;;  %3469 = vtanh.f32 %v1688_v21  ;;  %v3043_v56 = vpop.f32.mrf.mxu0 }
 0x11a   :  { %v3147_v49 = vpop.f32.mrf.mxu1  ;;  %v3446_v60 = vpop.eup %3445  ;;  %v4393_v33 = vadd.f32 %v3444_v41, %v4246_v58  ;;  %3471 = vtanh.f32 %v1264_v46  ;;  %v1275_v15 = vadd.f32 %v3043_v56, %v4174_v44 }
 0x11b   :  { %v1691_v36 = vadd.f32 %v3147_v49, %v4174_v44  ;;  %v3448_v63 = vpop.eup %3447  ;;  %v4398_v28 = vadd.f32 %v3446_v60, %v4248_v61  ;;  %3473 = vtanh.f32 %v1680_v22  ;;  %v1266_v40 = vpop.f32.mrf.mxu0 }
 0x11c   :  { %v1682_v18 = vpop.f32.mrf.mxu1  ;;  %v3450_v10 = vpop.eup %3449  ;;  %v4401_v21 = vadd.f32 %v3448_v63, %v4216_v27  ;;  %3475 = vtanh.f32 %v1275_v15  ;;  %v1267_v58 = vadd.f32 %v4174_v44, %v1266_v40 }
 0x11d   :  { %v1683_v46 = vadd.f32 %v4174_v44, %v1682_v18  ;;  %v3452_v41 = vpop.eup %3451  ;;  %v4406_v56 = vadd.f32 %v3450_v10, %v4218_v30  ;;  %3477 = vtanh.f32 %v1691_v36  ;;  %v3046_v49 = vpop.f32.mrf.mxu0 }
 0x11e   :  { %v3150_v61 = vpop.f32.mrf.mxu1  ;;  %v3454_v60 = vpop.eup %3453  ;;  %v4409_v22 = vadd.f32 %v3452_v41, %v4258_v6  ;;  %3479 = vtanh.f32 %v1267_v58  ;;  %v1288_v27 = vadd.f32 %v3046_v49, %v4174_v44 }
 0x11f   :  { %v1704_v15 = vadd.f32 %v3150_v61, %v4174_v44  ;;  %v3456_v63 = vpop.eup %3455  ;;  %v4414_v40 = vadd.f32 %v3454_v60, %v4260_v9  ;;  %3481 = vtanh.f32 %v1683_v46  ;;  %v1279_v18 = vpop.f32.mrf.mxu0 }
 0x120   :  { %v1695_v30 = vpop.f32.mrf.mxu1  ;;  %v3458_v10 = vpop.eup %3457  ;;  %v4417_v36 = vadd.f32 %v3456_v63, %v4228_v39  ;;  %3483 = vtanh.f32 %v1288_v27  ;;  %v1280_v6 = vadd.f32 %v4174_v44, %v1279_v18 }
 0x121   :  { %v1696_v58 = vadd.f32 %v4174_v44, %v1695_v30  ;;  %v3460_v41 = vpop.eup %3459  ;;  %v4422_v49 = vadd.f32 %v3458_v10, %v4230_v42  ;;  %3485 = vtanh.f32 %v1704_v15  ;;  %v3047_v61 = vpop.f32.mrf.mxu0 }
 0x122   :  { %v3151_v9 = vpop.f32.mrf.mxu1  ;;  %v3462_v60 = vpop.eup %3461  ;;  %v4425_v46 = vadd.f32 %v3460_v41, %v4270_v20  ;;  %3487 = vtanh.f32 %v1280_v6  ;;  %v1291_v39 = vadd.f32 %v3047_v61, %v4174_v44 }
 0x123   :  { %v1707_v27 = vadd.f32 %v3151_v9, %v4174_v44  ;;  %v3464_v63 = vpop.eup %3463  ;;  %v4430_v18 = vadd.f32 %v3462_v60, %v4272_v25  ;;  %3489 = vtanh.f32 %v1696_v58  ;;  %v1282_v30 = vpop.f32.mrf.mxu0 }
 0x124   :  { %v1698_v42 = vpop.f32.mrf.mxu1  ;;  %v3466_v10 = vpop.eup %3465  ;;  %v4433_v15 = vadd.f32 %v3464_v63, %v4240_v52  ;;  %3491 = vtanh.f32 %v1291_v39  ;;  %v1283_v20 = vadd.f32 %v4174_v44, %v1282_v30 }
 0x125   :  { %v1699_v6 = vadd.f32 %v4174_v44, %v1698_v42  ;;  %v3468_v41 = vpop.eup %3467  ;;  %v4438_v61 = vadd.f32 %v3466_v10, %v4242_v55  ;;  %3493 = vtanh.f32 %v1707_v27  ;;  %v3050_v9 = vpop.f32.mrf.mxu0 }
 0x126   :  { %v3154_v25 = vpop.f32.mrf.mxu1  ;;  %v3470_v60 = vpop.eup %3469  ;;  %v4441_v58 = vadd.f32 %v3468_v41, %v4282_v38  ;;  %3495 = vtanh.f32 %v1283_v20  ;;  %v1304_v52 = vadd.f32 %v3050_v9, %v4174_v44 }
 0x127   :  { %v1720_v39 = vadd.f32 %v3154_v25, %v4174_v44  ;;  %v3472_v63 = vpop.eup %3471  ;;  %v4446_v30 = vadd.f32 %v3470_v60, %v4284_v43  ;;  %3497 = vtanh.f32 %v1699_v6  ;;  %v1295_v42 = vpop.f32.mrf.mxu0 }
 0x128   :  { %v1711_v55 = vpop.f32.mrf.mxu1  ;;  %v3474_v10 = vpop.eup %3473  ;;  %v4449_v27 = vadd.f32 %v3472_v63, %v4252_v0  ;;  %3499 = vtanh.f32 %v1304_v52  ;;  %v1296_v38 = vadd.f32 %v4174_v44, %v1295_v42 }
 0x129   :  { %5199 = vst [vmem:[#allocation6_spill] sm:$0xff] %v4446_v30  ;;  %v1712_v20 = vadd.f32 %v4174_v44, %v1711_v55  ;;  %v3476_v41 = vpop.eup %3475  ;;  %v4454_v9 = vadd.f32 %v3474_v10, %v4254_v3  ;;  %3501 = vtanh.f32 %v1720_v39  ;;  %v3051_v25 = vpop.f32.mrf.mxu0 }
 0x12a   :  { %v3155_v43 = vpop.f32.mrf.mxu1  ;;  %v3478_v60 = vpop.eup %3477  ;;  %v4457_v6 = vadd.f32 %v3476_v41, %v4294_v57  ;;  %3503 = vtanh.f32 %v1296_v38  ;;  %v1307_v0 = vadd.f32 %v3051_v25, %v4174_v44 }
 0x12b   :  { %v1723_v52 = vadd.f32 %v3155_v43, %v4174_v44  ;;  %v3480_v63 = vpop.eup %3479  ;;  %v4462_v42 = vadd.f32 %v3478_v60, %v4296_v62  ;;  %3505 = vtanh.f32 %v1712_v20  ;;  %v1298_v55 = vpop.f32.mrf.mxu0 }
 0x12c   :  { %5200 = vst [vmem:[#allocation7_spill] sm:$0xff] %v4457_v6  ;;  %v1714_v3 = vpop.f32.mrf.mxu1  ;;  %v3482_v10 = vpop.eup %3481  ;;  %v4465_v39 = vadd.f32 %v3480_v63, %v4264_v12  ;;  %3507 = vtanh.f32 %v1307_v0  ;;  %v1299_v57 = vadd.f32 %v4174_v44, %v1298_v55 }
 0x12d   :  { %5201 = vst [vmem:[#allocation8_spill] sm:$0xff] %v4462_v42  ;;  %v1715_v38 = vadd.f32 %v4174_v44, %v1714_v3  ;;  %v3484_v41 = vpop.eup %3483  ;;  %v4470_v25 = vadd.f32 %v3482_v10, %v4266_v16  ;;  %3509 = vtanh.f32 %v1723_v52  ;;  %v3054_v43 = vpop.f32.mrf.mxu0 }
 0x12e   :  { %v3158_v62 = vpop.f32.mrf.mxu1  ;;  %v3486_v60 = vpop.eup %3485  ;;  %v4473_v20 = vadd.f32 %v3484_v41, %v4306_v11  ;;  %3511 = vtanh.f32 %v1299_v57  ;;  %v1320_v12 = vadd.f32 %v3054_v43, %v4174_v44 }
 0x12f   :  { %v1736_v0 = vadd.f32 %v3158_v62, %v4174_v44  ;;  %v3488_v63 = vpop.eup %3487  ;;  %v4478_v55 = vadd.f32 %v3486_v60, %v4308_v17  ;;  %3513 = vtanh.f32 %v1715_v38  ;;  %v1311_v3 = vpop.f32.mrf.mxu0 }
 0x130   :  { %5202 = vst [vmem:[#allocation9_spill] sm:$0xff] %v4473_v20  ;;  %v1727_v16 = vpop.f32.mrf.mxu1  ;;  %v3490_v10 = vpop.eup %3489  ;;  %v4481_v52 = vadd.f32 %v3488_v63, %v4276_v29  ;;  %3515 = vtanh.f32 %v1320_v12  ;;  %v1312_v11 = vadd.f32 %v4174_v44, %v1311_v3 }
 0x131   :  { %5203 = vst [vmem:[#allocation10_spill] sm:$0xff] %v4478_v55  ;;  %v1728_v57 = vadd.f32 %v4174_v44, %v1727_v16  ;;  %v3492_v41 = vpop.eup %3491  ;;  %v4486_v43 = vadd.f32 %v3490_v10, %v4278_v34  ;;  %3517 = vtanh.f32 %v1736_v0  ;;  %v3055_v62 = vpop.f32.mrf.mxu0 }
 0x132   :  { %v3159_v17 = vpop.f32.mrf.mxu1  ;;  %v3494_v60 = vpop.eup %3493  ;;  %v4489_v38 = vadd.f32 %v3492_v41, %v4318_v37  ;;  %3519 = vtanh.f32 %v1312_v11  ;;  %v1323_v29 = vadd.f32 %v3055_v62, %v4174_v44 }
 0x133   :  { %v1739_v12 = vadd.f32 %v3159_v17, %v4174_v44  ;;  %v3496_v63 = vpop.eup %3495  ;;  %v4494_v3 = vadd.f32 %v3494_v60, %v4320_v45  ;;  %3521 = vtanh.f32 %v1728_v57  ;;  %v1314_v16 = vpop.f32.mrf.mxu0 }
 0x134   :  { %5204 = vst [vmem:[#allocation11_spill] sm:$0xff] %v4489_v38  ;;  %v1730_v34 = vpop.f32.mrf.mxu1  ;;  %v3498_v10 = vpop.eup %3497  ;;  %v4497_v0 = vadd.f32 %v3496_v63, %v4288_v48  ;;  %3523 = vtanh.f32 %v1323_v29  ;;  %v1315_v37 = vadd.f32 %v4174_v44, %v1314_v16 }
 0x135   :  { %5205 = vst [vmem:[#allocation12_spill] sm:$0xff] %v4494_v3  ;;  %v1731_v11 = vadd.f32 %v4174_v44, %v1730_v34  ;;  %v3500_v41 = vpop.eup %3499  ;;  %v4502_v62 = vadd.f32 %v3498_v10, %v4290_v53  ;;  %3525 = vtanh.f32 %v1739_v12  ;;  %v3058_v17 = vpop.f32.mrf.mxu0 }
 0x136   :  { %5206 = vst [vmem:[#allocation13_spill] sm:$0xff] %v4497_v0  ;;  %v3162_v45 = vpop.f32.mrf.mxu1  ;;  %v3502_v60 = vpop.eup %3501  ;;  %v4505_v57 = vadd.f32 %v3500_v41, %v4330_v1  ;;  %3527 = vtanh.f32 %v1315_v37  ;;  %v1336_v48 = vadd.f32 %v3058_v17, %v4174_v44 }
 0x137   :  { %5207 = vst [vmem:[#allocation14_spill] sm:$0xff] %v4502_v62  ;;  %v1752_v29 = vadd.f32 %v3162_v45, %v4174_v44  ;;  %v3504_v63 = vpop.eup %3503  ;;  %v4510_v16 = vadd.f32 %v3502_v60, %v4332_v8  ;;  %3529 = vtanh.f32 %v1731_v11  ;;  %v1327_v34 = vpop.f32.mrf.mxu0 }
 0x138   :  { %5208 = vst [vmem:[#allocation15_spill] sm:$0xff] %v4505_v57  ;;  %v1743_v53 = vpop.f32.mrf.mxu1  ;;  %v3506_v10 = vpop.eup %3505  ;;  %v4513_v12 = vadd.f32 %v3504_v63, %v4300_v2  ;;  %3531 = vtanh.f32 %v1336_v48  ;;  %v1328_v1 = vadd.f32 %v4174_v44, %v1327_v34 }
 0x139   :  { %5209 = vst [vmem:[#allocation16_spill] sm:$0xff] %v4510_v16  ;;  %v1744_v37 = vadd.f32 %v4174_v44, %v1743_v53  ;;  %v3508_v41 = vpop.eup %3507  ;;  %v4518_v17 = vadd.f32 %v3506_v10, %v4302_v7  ;;  %3533 = vtanh.f32 %v1752_v29  ;;  %v3059_v45 = vpop.f32.mrf.mxu0 }
 0x13a   :  { %5210 = vst [vmem:[#allocation17_spill] sm:$0xff] %v4513_v12  ;;  %v3163_v8 = vpop.f32.mrf.mxu1  ;;  %v3510_v60 = vpop.eup %3509  ;;  %v4521_v11 = vadd.f32 %v3508_v41, %v4342_v35  ;;  %3535 = vtanh.f32 %v1328_v1  ;;  %v1339_v2 = vadd.f32 %v3059_v45, %v4174_v44 }
 0x13b   :  { %5211 = vst [vmem:[#allocation18_spill] sm:$0xff] %v4518_v17  ;;  %v1755_v48 = vadd.f32 %v3163_v8, %v4174_v44  ;;  %v3512_v63 = vpop.eup %3511  ;;  %v4526_v34 = vadd.f32 %v3510_v60, %v4344_v47  ;;  %3537 = vtanh.f32 %v1744_v37  ;;  %v1330_v53 = vpop.f32.mrf.mxu0 }
 0x13c   :  { %5212 = vst [vmem:[#allocation19_spill] sm:$0xff] %v4521_v11  ;;  %v1746_v7 = vpop.f32.mrf.mxu1  ;;  %v3514_v10 = vpop.eup %3513  ;;  %v4529_v29 = vadd.f32 %v3512_v63, %v4312_v23  ;;  %3539 = vtanh.f32 %v1339_v2  ;;  %v1331_v35 = vadd.f32 %v4174_v44, %v1330_v53 }
 0x13d   :  { %5213 = vst [vmem:[#allocation20_spill] sm:$0xff] %v4526_v34  ;;  %v1747_v1 = vadd.f32 %v4174_v44, %v1746_v7  ;;  %v3516_v41 = vpop.eup %3515  ;;  %v4534_v45 = vadd.f32 %v3514_v10, %v4314_v31  ;;  %3541 = vtanh.f32 %v1755_v48  ;;  %v3062_v8 = vpop.f32.mrf.mxu0 }
 0x13e   :  { %5214 = vst [vmem:[#allocation21_spill] sm:$0xff] %v4529_v29  ;;  %v3166_v47 = vpop.f32.mrf.mxu1  ;;  %v3518_v60 = vpop.eup %3517  ;;  %v4537_v37 = vadd.f32 %v3516_v41, %v4353_v19  ;;  %3543 = vtanh.f32 %v1331_v35  ;;  %v1352_v23 = vadd.f32 %v3062_v8, %v4174_v44 }
 0x13f   :  { %5215 = vst [vmem:[#allocation22_spill] sm:$0xff] %v4534_v45  ;;  %v1768_v2 = vadd.f32 %v3166_v47, %v4174_v44  ;;  %v3520_v63 = vpop.eup %3519  ;;  %v4542_v53 = vadd.f32 %v3518_v60, %v4358_v32  ;;  %3545 = vtanh.f32 %v1747_v1  ;;  %v1343_v7 = vpop.f32.mrf.mxu0 }
 0x140   :  { %5216 = vst [vmem:[#allocation23_spill] sm:$0xff] %v4537_v37  ;;  %v1759_v31 = vpop.f32.mrf.mxu1  ;;  %v3522_v10 = vpop.eup %3521  ;;  %v4545_v48 = vadd.f32 %v3520_v63, %v4324_v51  ;;  %3547 = vtanh.f32 %v1352_v23  ;;  %v1344_v19 = vadd.f32 %v4174_v44, %v1343_v7 }
 0x141   :  { %5217 = vst [vmem:[#allocation24_spill] sm:$0xff] %v4542_v53  ;;  %v1760_v35 = vadd.f32 %v4174_v44, %v1759_v31  ;;  %v3524_v41 = vpop.eup %3523  ;;  %v4550_v8 = vadd.f32 %v3522_v10, %v4326_v59  ;;  %3549 = vtanh.f32 %v1768_v2  ;;  %v3063_v47 = vpop.f32.mrf.mxu0 }
 0x142   :  { %5218 = vst [vmem:[#allocation25_spill] sm:$0xff] %v4545_v48  ;;  %v3167_v32 = vpop.f32.mrf.mxu1  ;;  %v3526_v60 = vpop.eup %3525  ;;  %v4553_v1 = vadd.f32 %v3524_v41, %v4367_v4  ;;  %3551 = vtanh.f32 %v1344_v19  ;;  %v1355_v51 = vadd.f32 %v3063_v47, %v4174_v44  ;;  %v4566_v4 = vld [vmem:[%s5193_s2] ss:$0 sm:$0xff] }
 0x143   :  { %5219 = vst [vmem:[#allocation26_spill] sm:$0xff] %v4550_v8  ;;  %v1771_v23 = vadd.f32 %v3167_v32, %v4174_v44  ;;  %v3528_v63 = vpop.eup %3527  ;;  %v4558_v7 = vadd.f32 %v3526_v60, %v4372_v13  ;;  %3553 = vtanh.f32 %v1760_v35  ;;  %v1346_v31 = vpop.f32.mrf.mxu0 }
 0x144   :  { %5220 = vst [vmem:[#allocation27_spill] sm:$0xff] %v4553_v1  ;;  %v1762_v59 = vpop.f32.mrf.mxu1  ;;  %v3530_v10 = vpop.eup %3529  ;;  %v4561_v2 = vadd.f32 %v3528_v63, %v4336_v14  ;;  %3555 = vtanh.f32 %v1355_v51  ;;  %v1347_v19 = vadd.f32 %v4566_v4, %v1346_v31 }
 0x145   :  { %5221 = vst [vmem:[#allocation28_spill] sm:$0xff] %v4558_v7  ;;  %v1763_v44 = vadd.f32 %v4566_v4, %v1762_v59  ;;  %v4570_v41 = vpop.eup %3531  ;;  %v4573_v13 = vadd.f32 %v3530_v10, %v4338_v26  ;;  %3557 = vtanh.f32 %v1771_v23  ;;  %v3066_v35 = vpop.f32.mrf.mxu0 }
 0x146   :  { %5222 = vst [vmem:[#allocation29_spill] sm:$0xff] %v4561_v2  ;;  %v3170_v47 = vpop.f32.mrf.mxu1  ;;  %v4575_v14 = vpop.eup %3533  ;;  %3559 = vtanh.f32 %v1347_v19  ;;  %v1368_v32 = vadd.f32 %v4566_v4, %v3066_v35 }
 0x147   :  { %5223 = vst [vmem:[#allocation30_spill] sm:$0xff] %v4573_v13  ;;  %v1784_v60 = vadd.f32 %v4566_v4, %v3170_v47  ;;  %v4579_v51 = vpop.eup %3535  ;;  %3561 = vtanh.f32 %v1763_v44  ;;  %v1359_v63 = vpop.f32.mrf.mxu0 }
 0x148   :  { %v1775_v31 = vpop.f32.mrf.mxu1  ;;  %v4581_v59 = vpop.eup %3537  ;;  %3563 = vtanh.f32 %v1368_v32  ;;  %v1360_v26 = vadd.f32 %v4566_v4, %v1359_v63 }
 0x149   :  { %v1776_v23 = vadd.f32 %v4566_v4, %v1775_v31  ;;  %v4585_v10 = vpop.eup %3539  ;;  %3565 = vtanh.f32 %v1784_v60  ;;  %v3067_v19 = vpop.f32.mrf.mxu0 }
 0x14a   :  { %v3171_v13 = vpop.f32.mrf.mxu1  ;;  %v4587_v35 = vpop.eup %3541  ;;  %3567 = vtanh.f32 %v1360_v26  ;;  %v1371_v47 = vadd.f32 %v4566_v4, %v3067_v19 }
 0x14b   :  { %v1787_v44 = vadd.f32 %v4566_v4, %v3171_v13  ;;  %v4591_v2 = vpop.eup %3543  ;;  %3569 = vtanh.f32 %v1776_v23  ;;  %v1362_v32 = vpop.f32.mrf.mxu0 }
 0x14c   :  { %v1778_v7 = vpop.f32.mrf.mxu1  ;;  %v4593_v63 = vpop.eup %3545  ;;  %3571 = vtanh.f32 %v1371_v47  ;;  %v1363_v31 = vadd.f32 %v4566_v4, %v1362_v32 }
 0x14d   :  { %v1779_v60 = vadd.f32 %v4566_v4, %v1778_v7  ;;  %v4597_v1 = vpop.eup %3547  ;;  %3573 = vtanh.f32 %v1787_v44  ;;  %v3070_v26 = vpop.f32.mrf.mxu0 }
 0x14e   :  { %v3174_v8 = vpop.f32.mrf.mxu1  ;;  %v4599_v19 = vpop.eup %3549  ;;  %3575 = vtanh.f32 %v1363_v31  ;;  %v1384_v13 = vadd.f32 %v4566_v4, %v3070_v26 }
 0x14f   :  { %v1800_v23 = vadd.f32 %v4566_v4, %v3174_v8  ;;  %v4603_v48 = vpop.eup %3551  ;;  %3577 = vtanh.f32 %v1779_v60  ;;  %v1375_v47 = vpop.f32.mrf.mxu0 }
 0x150   :  { %v1791_v53 = vpop.f32.mrf.mxu1  ;;  %v4605_v32 = vpop.eup %3553  ;;  %3579 = vtanh.f32 %v1384_v13  ;;  %v1376_v7 = vadd.f32 %v4566_v4, %v1375_v47 }
 0x151   :  { %v1792_v44 = vadd.f32 %v4566_v4, %v1791_v53  ;;  %v4609_v37 = vpop.eup %3555  ;;  %3581 = vtanh.f32 %v1800_v23  ;;  %v3071_v31 = vpop.f32.mrf.mxu0 }
 0x152   :  { %v3175_v45 = vpop.f32.mrf.mxu1  ;;  %v4611_v26 = vpop.eup %3557  ;;  %3583 = vtanh.f32 %v1376_v7  ;;  %v1387_v8 = vadd.f32 %v4566_v4, %v3071_v31 }
 0x153   :  { %v1803_v60 = vadd.f32 %v4566_v4, %v3175_v45  ;;  %v4615_v29 = vpop.eup %3559  ;;  %3585 = vtanh.f32 %v1792_v44  ;;  %v1378_v13 = vpop.f32.mrf.mxu0 }
 0x154   :  { %v1794_v34 = vpop.f32.mrf.mxu1  ;;  %v4617_v47 = vpop.eup %3561  ;;  %3587 = vtanh.f32 %v1387_v8  ;;  %v1379_v53 = vadd.f32 %v4566_v4, %v1378_v13 }
 0x155   :  { %v1795_v23 = vadd.f32 %v4566_v4, %v1794_v34  ;;  %v4621_v11 = vpop.eup %3563  ;;  %3589 = vtanh.f32 %v1803_v60  ;;  %v3074_v7 = vpop.f32.mrf.mxu0 }
 0x156   :  { %v3178_v17 = vpop.f32.mrf.mxu1  ;;  %v4623_v31 = vpop.eup %3565  ;;  %3591 = vtanh.f32 %v1379_v53  ;;  %v1400_v45 = vadd.f32 %v4566_v4, %v3074_v7 }
 0x157   :  { %v1816_v44 = vadd.f32 %v4566_v4, %v3178_v17  ;;  %v4627_v12 = vpop.eup %3567  ;;  %3593 = vtanh.f32 %v1795_v23  ;;  %v1391_v8 = vpop.f32.mrf.mxu0 }
 0x158   :  { %v1807_v16 = vpop.f32.mrf.mxu1  ;;  %v4629_v13 = vpop.eup %3569  ;;  %3595 = vtanh.f32 %v1400_v45  ;;  %v1392_v34 = vadd.f32 %v4566_v4, %v1391_v8 }
 0x159   :  { %v1808_v60 = vadd.f32 %v4566_v4, %v1807_v16  ;;  %v4633_v57 = vpop.eup %3571  ;;  %3597 = vtanh.f32 %v1816_v44  ;;  %v3075_v53 = vpop.f32.mrf.mxu0 }
 0x15a   :  { %v3179_v3 = vpop.f32.mrf.mxu1  ;;  %v4635_v7 = vpop.eup %3573  ;;  %3599 = vtanh.f32 %v1392_v34  ;;  %v1403_v17 = vadd.f32 %v4566_v4, %v3075_v53 }
 0x15b   :  { %v1819_v23 = vadd.f32 %v4566_v4, %v3179_v3  ;;  %v4639_v38 = vpop.eup %3575  ;;  %3601 = vtanh.f32 %v1808_v60  ;;  %v1394_v45 = vpop.f32.mrf.mxu0 }
 0x15c   :  { %v1810_v55 = vpop.f32.mrf.mxu1  ;;  %v4641_v8 = vpop.eup %3577  ;;  %3603 = vtanh.f32 %v1403_v17  ;;  %v1395_v16 = vadd.f32 %v4566_v4, %v1394_v45 }
 0x15d   :  { %v1811_v44 = vadd.f32 %v4566_v4, %v1810_v55  ;;  %v4645_v20 = vpop.eup %3579  ;;  %3605 = vtanh.f32 %v1819_v23  ;;  %v3078_v34 = vpop.f32.mrf.mxu0 }
 0x15e   :  { %v3182_v42 = vpop.f32.mrf.mxu1  ;;  %v4647_v53 = vpop.eup %3581  ;;  %3607 = vtanh.f32 %v1395_v16  ;;  %v1416_v3 = vadd.f32 %v4566_v4, %v3078_v34 }
 0x15f   :  { %v1832_v60 = vadd.f32 %v4566_v4, %v3182_v42  ;;  %v4651_v6 = vpop.eup %3583  ;;  %3609 = vtanh.f32 %v1811_v44  ;;  %v1407_v17 = vpop.f32.mrf.mxu0 }
 0x160   :  { %5224 = vst [vmem:[#allocation31_spill] sm:$0xff] %v4651_v6  ;;  %v1823_v62 = vpop.f32.mrf.mxu1  ;;  %v4653_v45 = vpop.eup %3585  ;;  %3611 = vtanh.f32 %v1416_v3  ;;  %v1408_v55 = vadd.f32 %v4566_v4, %v1407_v17 }
 0x161   :  { %5225 = vst [vmem:[#allocation32_spill] sm:$0xff] %v4653_v45  ;;  %v1824_v23 = vadd.f32 %v4566_v4, %v1823_v62  ;;  %v4657_v0 = vpop.eup %3587  ;;  %3613 = vtanh.f32 %v1832_v60  ;;  %v3079_v16 = vpop.f32.mrf.mxu0 }
 0x162   :  { %5226 = vst [vmem:[#allocation33_spill] sm:$0xff] %v4657_v0  ;;  %v3183_v30 = vpop.f32.mrf.mxu1  ;;  %v4659_v34 = vpop.eup %3589  ;;  %3615 = vtanh.f32 %v1408_v55  ;;  %v1419_v42 = vadd.f32 %v4566_v4, %v3079_v16 }
 0x163   :  { %5227 = vst [vmem:[#allocation34_spill] sm:$0xff] %v4659_v34  ;;  %v1835_v44 = vadd.f32 %v4566_v4, %v3183_v30  ;;  %v4663_v6 = vpop.eup %3591  ;;  %3617 = vtanh.f32 %v1824_v23  ;;  %v1410_v3 = vpop.f32.mrf.mxu0 }
 0x164   :  { %5228 = vst [vmem:[#allocation35_spill] sm:$0xff] %v4663_v6  ;;  %v1826_v45 = vpop.f32.mrf.mxu1  ;;  %v4665_v17 = vpop.eup %3593  ;;  %3619 = vtanh.f32 %v1419_v42  ;;  %v1411_v62 = vadd.f32 %v4566_v4, %v1410_v3 }
 0x165   :  { %5229 = vst [vmem:[#allocation36_spill] sm:$0xff] %v4665_v17  ;;  %v1827_v60 = vadd.f32 %v4566_v4, %v1826_v45  ;;  %v4669_v0 = vpop.eup %3595  ;;  %3621 = vtanh.f32 %v1835_v44  ;;  %v3082_v55 = vpop.f32.mrf.mxu0  ;;  %v4681_v45 = vadd.f32 %v4570_v41, %v4385_v54 }
 0x166   :  { %5230 = vst [vmem:[#allocation37_spill] sm:$0xff] %v4669_v0  ;;  %v3186_v34 = vpop.f32.mrf.mxu1  ;;  %v4671_v16 = vpop.eup %3597  ;;  %3623 = vtanh.f32 %v1411_v62  ;;  %v1432_v30 = vadd.f32 %v4566_v4, %v3082_v55  ;;  %v5234_v0 = vld [vmem:[#allocation3_spill] sm:$0xff] }
 0x167   :  { %5231 = vst [vmem:[#allocation38_spill] sm:$0xff] %v4671_v16  ;;  %v1848_v23 = vadd.f32 %v4566_v4, %v3186_v34  ;;  %v4675_v6 = vpop.eup %3599  ;;  %3625 = vtanh.f32 %v1827_v60  ;;  %v1423_v42 = vpop.f32.mrf.mxu0  ;;  %v4689_v34 = vadd.f32 %v4575_v14, %v4390_v50  ;;  %v5233_v60 = vld [vmem:[#allocation2_spill] sm:$0xff] }
 0x168   :  { %v1839_v17 = vpop.f32.mrf.mxu1  ;;  %v4677_v3 = vpop.eup %3601  ;;  %3627 = vtanh.f32 %v1432_v30  ;;  %v1424_v44 = vadd.f32 %v4566_v4, %v1423_v42  ;;  %v4693_v55 = vadd.f32 %v4579_v51, %v5233_v60  ;;  %v5236_v42 = vld [vmem:[#allocation5_spill] sm:$0xff] }
 0x169   :  { %5232 = vst [vmem:[#allocation39_spill] sm:$0xff] %v4677_v3  ;;  %v1840_v62 = vadd.f32 %v4566_v4, %v1839_v17  ;;  %v4685_v16 = vpop.eup %3603  ;;  %v4697_v3 = vadd.f32 %v4581_v59, %v5234_v0  ;;  %3629 = vtanh.f32 %v1848_v23  ;;  %v3083_v54 = vpop.f32.mrf.mxu0  ;;  %v4703_v17 = vadd.f32 %v4585_v10, %v4401_v21  ;;  %v5235_v59 = vld [vmem:[#allocation4_spill] sm:$0xff] }
 0x16a   :  { %v3187_v41 = vpop.f32.mrf.mxu1  ;;  %v4699_v30 = vpop.eup %3605  ;;  %3631 = vtanh.f32 %v1424_v44  ;;  %v1435_v50 = vadd.f32 %v4566_v4, %v3083_v54  ;;  %v4711_v0 = vadd.f32 %v4587_v35, %v4406_v56  ;;  %v4715_v23 = vadd.f32 %v4591_v2, %v5235_v59 }
 0x16b   :  { %v1851_v14 = vadd.f32 %v4566_v4, %v3187_v41  ;;  %v4707_v51 = vpop.eup %3607  ;;  %v4719_v60 = vadd.f32 %v4593_v63, %v5236_v42  ;;  %3633 = vtanh.f32 %v1840_v62  ;;  %v1426_v21 = vpop.f32.mrf.mxu0  ;;  %v4725_v54 = vadd.f32 %v4597_v1, %v4417_v36 }
 0x16c   :  { %v1842_v10 = vpop.f32.mrf.mxu1  ;;  %v4721_v44 = vpop.eup %3609  ;;  %3635 = vtanh.f32 %v1435_v50  ;;  %v1427_v56 = vadd.f32 %v4566_v4, %v1426_v21  ;;  %v4733_v63 = vadd.f32 %v4599_v19, %v4422_v49  ;;  %v4737_v62 = vadd.f32 %v4603_v48, %v4377_v5 }
 0x16d   :  { %v1843_v35 = vadd.f32 %v4566_v4, %v1842_v10  ;;  %v4729_v2 = vpop.eup %3611  ;;  %v4741_v41 = vadd.f32 %v4605_v32, %v4382_v24  ;;  %3637 = vtanh.f32 %v1851_v14  ;;  %v3086_v36 = vpop.f32.mrf.mxu0  ;;  %v4747_v59 = vadd.f32 %v4609_v37, %v4433_v15 }
 0x16e   :  { %v3190_v1 = vpop.f32.mrf.mxu1  ;;  %v4743_v50 = vpop.eup %3613  ;;  %3639 = vtanh.f32 %v1427_v56  ;;  %v1448_v49 = vadd.f32 %v4566_v4, %v3086_v36  ;;  %v4755_v24 = vadd.f32 %v4611_v26, %v4438_v61  ;;  %v4759_v48 = vadd.f32 %v4615_v29, %v4393_v33  ;;  %v5239_v36 = vld [vmem:[#allocation6_spill] sm:$0xff] }
 0x16f   :  { %v1864_v19 = vadd.f32 %v4566_v4, %v3190_v1  ;;  %v4751_v5 = vpop.eup %3615  ;;  %v4763_v32 = vadd.f32 %v4617_v47, %v4398_v28  ;;  %3641 = vtanh.f32 %v1843_v35  ;;  %v1439_v15 = vpop.f32.mrf.mxu0  ;;  %v4769_v42 = vadd.f32 %v4621_v11, %v4449_v27  ;;  %v5240_v1 = vld [vmem:[#allocation32_spill] sm:$0xff] }
 0x170   :  { %v1855_v37 = vpop.f32.mrf.mxu1  ;;  %v4765_v14 = vpop.eup %3617  ;;  %3643 = vtanh.f32 %v1448_v49  ;;  %v1440_v61 = vadd.f32 %v4566_v4, %v1439_v15  ;;  %v4777_v28 = vadd.f32 %v4623_v31, %v4454_v9  ;;  %v4781_v26 = vadd.f32 %v4627_v12, %v4409_v22 }
 0x171   :  { %v1856_v33 = vadd.f32 %v4566_v4, %v1855_v37  ;;  %v4773_v29 = vpop.eup %3619  ;;  %v4785_v47 = vadd.f32 %v4629_v13, %v4414_v40  ;;  %3645 = vtanh.f32 %v1864_v19  ;;  %v3087_v27 = vpop.f32.mrf.mxu0  ;;  %v4791_v10 = vadd.f32 %v4633_v57, %v4465_v39 }
 0x172   :  { %v3191_v11 = vpop.f32.mrf.mxu1  ;;  %v4787_v21 = vpop.eup %3621  ;;  %3647 = vtanh.f32 %v1440_v61  ;;  %v1451_v9 = vadd.f32 %v4566_v4, %v3087_v27  ;;  %v4799_v40 = vadd.f32 %v4635_v7, %v4470_v25  ;;  %v4803_v12 = vadd.f32 %v4639_v38, %v4425_v46  ;;  %v5241_v61 = vld [vmem:[#allocation13_spill] sm:$0xff]  ;;  %v5243_v27 = vld [vmem:[#allocation14_spill] sm:$0xff] }
 0x173   :  { %5237 = vst [vmem:[#allocation2_spill] sm:$0xff] %v4787_v21  ;;  %v1867_v31 = vadd.f32 %v4566_v4, %v3191_v11  ;;  %v4795_v22 = vpop.eup %3623  ;;  %v4807_v13 = vadd.f32 %v4641_v8, %v4430_v18  ;;  %3649 = vtanh.f32 %v1856_v33  ;;  %v1442_v39 = vpop.f32.mrf.mxu0  ;;  %v4813_v35 = vadd.f32 %v4645_v20, %v4481_v52  ;;  %v5238_v18 = vld [vmem:[#allocation31_spill] sm:$0xff]  ;;  %v5244_v11 = vld [vmem:[#allocation34_spill] sm:$0xff] }
 0x174   :  { %v1858_v57 = vpop.f32.mrf.mxu1  ;;  %v4809_v56 = vpop.eup %3625  ;;  %3651 = vtanh.f32 %v1451_v9  ;;  %v1443_v25 = vadd.f32 %v4566_v4, %v1442_v39  ;;  %v4819_v38 = vadd.f32 %v4647_v53, %v4486_v43  ;;  %v4823_v8 = vadd.f32 %v5238_v18, %v4441_v58  ;;  %v5242_v58 = vld [vmem:[#allocation33_spill] sm:$0xff] }
 0x175   :  { %v1859_v7 = vadd.f32 %v4566_v4, %v1858_v57  ;;  %v3628_v46 = vpop.eup %3627  ;;  %v4827_v49 = vadd.f32 %v5240_v1, %v5239_v36  ;;  %3653 = vtanh.f32 %v1867_v31  ;;  %v3090_v20 = vpop.f32.mrf.mxu0  ;;  %v4836_v33 = vadd.f32 %v5242_v58, %v5241_v61  ;;  %v5248_v61 = vld [vmem:[#allocation36_spill] sm:$0xff] }
 0x176   :  { %v3194_v52 = vpop.f32.mrf.mxu1  ;;  %v3630_v19 = vpop.eup %3629  ;;  %v2262_v15 = vadd.f32 %v3628_v46, %v4693_v55  ;;  %3655 = vtanh.f32 %v1443_v25  ;;  %v1464_v37 = vadd.f32 %v4566_v4, %v3090_v20  ;;  %v4840_v9 = vadd.f32 %v5244_v11, %v5243_v27  ;;  %v5245_v25 = vld [vmem:[#allocation7_spill] sm:$0xff] }
 0x177   :  { %v1880_v43 = vadd.f32 %v4566_v4, %v3194_v52  ;;  %v4832_v53 = vpop.eup %3631  ;;  %v2288_v31 = vadd.f32 %v3630_v19, %v4697_v3  ;;  %3657 = vtanh.f32 %v1859_v7  ;;  %v1455_v39 = vpop.f32.mrf.mxu0  ;;  %v5246_v46 = vld [vmem:[#allocation35_spill] sm:$0xff]  ;;  %v5247_v52 = vld [vmem:[#allocation8_spill] sm:$0xff] }
 0x178   :  { %v1871_v55 = vpop.f32.mrf.mxu1  ;;  %v4843_v57 = vpop.eup %3633  ;;  %v4847_v18 = vadd.f32 %v5246_v46, %v5245_v25  ;;  %v2842_v36 = vpack.c.bf16 %v2262_v15, %v2262_v15  ;;  %3659 = vtanh.f32 %v1464_v37  ;;  %v1456_v1 = vadd.f32 %v4566_v4, %v1455_v39  ;;  %v5251_v46 = vld [vmem:[#allocation39_spill] sm:$0xff] }
 0x179   :  { %v3636_v20 = vpop.eup %3635  ;;  %v4852_v58 = vadd.f32 %v5248_v61, %v5247_v52  ;;  %v2868_v27 = vpack.c.bf16 %v2288_v31, %v2288_v31  ;;  %3661 = vtanh.f32 %v1880_v43  ;;  %v1872_v3 = vadd.f32 %v4566_v4, %v1871_v55  ;;  %v3091_v7 = vpop.f32.mrf.mxu0  ;;  %v5249_v43 = vld [vmem:[#allocation9_spill] sm:$0xff]  ;;  %v5250_v55 = vld [vmem:[#allocation10_spill] sm:$0xff]  ;;  %v5252_v61 = vld [vmem:[#allocation11_spill] sm:$0xff] }
 0x17a   :  { %v3195_v19 = vpop.f32.mrf.mxu1  ;;  %v3638_v11 = vpop.eup %3637  ;;  %2523 = vst.msk [vmem:[%s5194_s3] sm:$0xf] %vm2522_vm3, %v2842_v36  ;;  %v2263_v15 = vadd.f32 %v3636_v20, %v4715_v23  ;;  %3663 = vtanh.f32 %v1456_v1  ;;  %v1467_v37 = vadd.f32 %v4566_v4, %v3091_v7  ;;  %v4866_v31 = vadd.f32 %v4675_v6, %v5249_v43 }
 0x17b   :  { %v1883_v39 = vadd.f32 %v4566_v4, %v3195_v19  ;;  %v4862_v25 = vpop.eup %3639  ;;  %v4870_v52 = vadd.f32 %v5251_v46, %v5250_v55  ;;  %2549 = vst.msk [vmem:[%s5194_s3 + $0x68] sm:$0xf] %vm2522_vm3, %v2868_v27  ;;  %v2289_v23 = vadd.f32 %v3638_v11, %v4719_v60  ;;  %3665 = vtanh.f32 %v1872_v3  ;;  %v1458_v36 = vpop.f32.mrf.mxu0  ;;  %v5253_v55 = vld [vmem:[#allocation12_spill] sm:$0xff] }
 0x17c   :  { %v1874_v1 = vpop.f32.mrf.mxu1  ;;  %v4877_v20 = vpop.eup %3641  ;;  %v4881_v6 = vadd.f32 %v4707_v51, %v5252_v61  ;;  %v2843_v7 = vpack.c.bf16 %v2263_v15, %v2263_v15  ;;  %3667 = vtanh.f32 %v1467_v37  ;;  %v1459_v19 = vadd.f32 %v4566_v4, %v1458_v36  ;;  %v5255_v36 = vld [vmem:[#allocation16_spill] sm:$0xff] }
 0x17d   :  { %v3644_v43 = vpop.eup %3643  ;;  %v4886_v46 = vadd.f32 %v4721_v44, %v5253_v55  ;;  %v2869_v27 = vpack.c.bf16 %v2289_v23, %v2289_v23  ;;  %3669 = vtanh.f32 %v1883_v39  ;;  %v1875_v60 = vadd.f32 %v4566_v4, %v1874_v1  ;;  %v3094_v3 = vpop.f32.mrf.mxu0  ;;  %v5254_v23 = vld [vmem:[#allocation15_spill] sm:$0xff] }
 0x17e   :  { %v3198_v11 = vpop.f32.mrf.mxu1  ;;  %v3646_v21 = vpop.eup %3645  ;;  %2524 = vst.msk [vmem:[%s5194_s3 + $0x4] sm:$0xf] %vm2522_vm3, %v2843_v7  ;;  %v2266_v51 = vadd.f32 %v3644_v43, %v4737_v62  ;;  %3671 = vtanh.f32 %v1459_v19  ;;  %v1480_v15 = vadd.f32 %v4566_v4, %v3094_v3  ;;  %v4898_v39 = vadd.f32 %v4751_v5, %v5254_v23 }
 0x17f   :  { %v1896_v44 = vadd.f32 %v4566_v4, %v3198_v11  ;;  %v3648_v37 = vpop.eup %3647  ;;  %v4902_v1 = vadd.f32 %v4765_v14, %v5255_v36  ;;  %2550 = vst.msk [vmem:[%s5194_s3 + $0x6c] sm:$0xf] %vm2522_vm3, %v2869_v27  ;;  %v2292_v62 = vadd.f32 %v3646_v21, %v4741_v41  ;;  %3673 = vtanh.f32 %v1875_v60  ;;  %v1471_v61 = vpop.f32.mrf.mxu0 }
 0x180   :  { %v1887_v7 = vpop.f32.mrf.mxu1  ;;  %v3650_v19 = vpop.eup %3649  ;;  %v2846_v43 = vpack.c.bf16 %v2266_v51, %v2266_v51  ;;  %v2264_v55 = vadd.f32 %v3648_v37, %v4681_v45  ;;  %3675 = vtanh.f32 %v1480_v15  ;;  %v1472_v5 = vadd.f32 %v4566_v4, %v1471_v61 }
 0x181   :  { %v3652_v3 = vpop.eup %3651  ;;  %v2872_v14 = vpack.c.bf16 %v2292_v62, %v2292_v62  ;;  %v2290_v11 = vadd.f32 %v3650_v19, %v4689_v34  ;;  %3677 = vtanh.f32 %v1896_v44  ;;  %v1888_v23 = vadd.f32 %v4566_v4, %v1887_v7  ;;  %v3095_v27 = vpop.f32.mrf.mxu0 }
 0x182   :  { %v3199_v36 = vpop.f32.mrf.mxu1  ;;  %v3654_v41 = vpop.eup %3653  ;;  %2527 = vst.msk [vmem:[%s5194_s3 + $0x10] sm:$0xf] %vm2522_vm3, %v2846_v43  ;;  %v2844_v21 = vpack.c.bf16 %v2264_v55, %v2264_v55  ;;  %v2267_v45 = vadd.f32 %v3652_v3, %v4759_v48  ;;  %3679 = vtanh.f32 %v1472_v5  ;;  %v1483_v60 = vadd.f32 %v4566_v4, %v3095_v27 }
 0x183   :  { %v3656_v51 = vpop.eup %3655  ;;  %2553 = vst.msk [vmem:[%s5194_s3 + $0x78] sm:$0xf] %vm2522_vm3, %v2872_v14  ;;  %v2870_v34 = vpack.c.bf16 %v2290_v11, %v2290_v11  ;;  %v2293_v15 = vadd.f32 %v3654_v41, %v4763_v32  ;;  %3681 = vtanh.f32 %v1888_v23  ;;  %v1899_v44 = vadd.f32 %v4566_v4, %v3199_v36  ;;  %v1474_v37 = vpop.f32.mrf.mxu0 }
 0x184   :  { %v1890_v62 = vpop.f32.mrf.mxu1  ;;  %v3658_v61 = vpop.eup %3657  ;;  %2525 = vst.msk [vmem:[%s5194_s3 + $0x8] sm:$0xf] %vm2522_vm3, %v2844_v21  ;;  %v2847_v48 = vpack.c.bf16 %v2267_v45, %v2267_v45  ;;  %v2265_v7 = vadd.f32 %v3656_v51, %v4703_v17  ;;  %3683 = vtanh.f32 %v1483_v60  ;;  %v1475_v19 = vadd.f32 %v4566_v4, %v1474_v37 }
 0x185   :  { %v3660_v43 = vpop.eup %3659  ;;  %2551 = vst.msk [vmem:[%s5194_s3 + $0x70] sm:$0xf] %vm2522_vm3, %v2870_v34  ;;  %v2873_v32 = vpack.c.bf16 %v2293_v15, %v2293_v15  ;;  %v2291_v55 = vadd.f32 %v3658_v61, %v4711_v0  ;;  %3685 = vtanh.f32 %v1899_v44  ;;  %v1891_v5 = vadd.f32 %v4566_v4, %v1890_v62  ;;  %v3098_v3 = vpop.f32.mrf.mxu0 }
 0x186   :  { %v3202_v14 = vpop.f32.mrf.mxu1  ;;  %v3662_v11 = vpop.eup %3661  ;;  %2528 = vst.msk [vmem:[%s5194_s3 + $0x14] sm:$0xf] %vm2522_vm3, %v2847_v48  ;;  %v2845_v17 = vpack.c.bf16 %v2265_v7, %v2265_v7  ;;  %v2270_v23 = vadd.f32 %v3660_v43, %v4781_v26  ;;  %3687 = vtanh.f32 %v1475_v19  ;;  %v1496_v27 = vadd.f32 %v4566_v4, %v3098_v3 }
 0x187   :  { %v3664_v36 = vpop.eup %3663  ;;  %2554 = vst.msk [vmem:[%s5194_s3 + $0x7c] sm:$0xf] %vm2522_vm3, %v2873_v32  ;;  %v2871_v0 = vpack.c.bf16 %v2291_v55, %v2291_v55  ;;  %v2296_v41 = vadd.f32 %v3662_v11, %v4785_v47  ;;  %3689 = vtanh.f32 %v1891_v5  ;;  %v1912_v21 = vadd.f32 %v4566_v4, %v3202_v14  ;;  %v1487_v45 = vpop.f32.mrf.mxu0 }
 0x188   :  { %v1903_v60 = vpop.f32.mrf.mxu1  ;;  %v3666_v51 = vpop.eup %3665  ;;  %2526 = vst.msk [vmem:[%s5194_s3 + $0xc] sm:$0xf] %vm2522_vm3, %v2845_v17  ;;  %v2850_v26 = vpack.c.bf16 %v2270_v23, %v2270_v23  ;;  %v2268_v34 = vadd.f32 %v3664_v36, %v4725_v54  ;;  %3691 = vtanh.f32 %v1496_v27  ;;  %v1488_v15 = vadd.f32 %v4566_v4, %v1487_v45 }
 0x189   :  { %v3668_v44 = vpop.eup %3667  ;;  %2552 = vst.msk [vmem:[%s5194_s3 + $0x74] sm:$0xf] %vm2522_vm3, %v2871_v0  ;;  %v2876_v47 = vpack.c.bf16 %v2296_v41, %v2296_v41  ;;  %v2294_v37 = vadd.f32 %v3666_v51, %v4733_v63  ;;  %3693 = vtanh.f32 %v1912_v21  ;;  %v1904_v62 = vadd.f32 %v4566_v4, %v1903_v60  ;;  %v3099_v61 = vpop.f32.mrf.mxu0 }
 0x18a   :  { %v3203_v48 = vpop.f32.mrf.mxu1  ;;  %v3670_v7 = vpop.eup %3669  ;;  %2531 = vst.msk [vmem:[%s5194_s3 + $0x20] sm:$0xf] %vm2522_vm3, %v2850_v26  ;;  %v2848_v54 = vpack.c.bf16 %v2268_v34, %v2268_v34  ;;  %v2271_v19 = vadd.f32 %v3668_v44, %v4803_v12  ;;  %3695 = vtanh.f32 %v1488_v15  ;;  %v1499_v43 = vadd.f32 %v4566_v4, %v3099_v61 }
 0x18b   :  { %v3672_v32 = vpop.eup %3671  ;;  %2557 = vst.msk [vmem:[%s5194_s3 + $0x88] sm:$0xf] %vm2522_vm3, %v2876_v47  ;;  %v2874_v63 = vpack.c.bf16 %v2294_v37, %v2294_v37  ;;  %v2297_v55 = vadd.f32 %v3670_v7, %v4807_v13  ;;  %3697 = vtanh.f32 %v1904_v62  ;;  %v1915_v5 = vadd.f32 %v4566_v4, %v3203_v48  ;;  %v1490_v3 = vpop.f32.mrf.mxu0 }
 0x18c   :  { %v1906_v14 = vpop.f32.mrf.mxu1  ;;  %v3674_v11 = vpop.eup %3673  ;;  %2529 = vst.msk [vmem:[%s5194_s3 + $0x18] sm:$0xf] %vm2522_vm3, %v2848_v54  ;;  %v2851_v12 = vpack.c.bf16 %v2271_v19, %v2271_v19  ;;  %v2269_v17 = vadd.f32 %v3672_v32, %v4747_v59  ;;  %3699 = vtanh.f32 %v1499_v43  ;;  %v1491_v23 = vadd.f32 %v4566_v4, %v1490_v3 }
 0x18d   :  { %v3676_v27 = vpop.eup %3675  ;;  %2555 = vst.msk [vmem:[%s5194_s3 + $0x80] sm:$0xf] %vm2522_vm3, %v2874_v63  ;;  %v2877_v13 = vpack.c.bf16 %v2297_v55, %v2297_v55  ;;  %v2295_v36 = vadd.f32 %v3674_v11, %v4755_v24  ;;  %3701 = vtanh.f32 %v1915_v5  ;;  %v1907_v0 = vadd.f32 %v4566_v4, %v1906_v14  ;;  %v3102_v41 = vpop.f32.mrf.mxu0 }
 0x18e   :  { %v3206_v21 = vpop.f32.mrf.mxu1  ;;  %v3678_v45 = vpop.eup %3677  ;;  %2532 = vst.msk [vmem:[%s5194_s3 + $0x24] sm:$0xf] %vm2522_vm3, %v2851_v12  ;;  %v2849_v59 = vpack.c.bf16 %v2269_v17, %v2269_v17  ;;  %v2274_v60 = vadd.f32 %v3676_v27, %v4823_v8  ;;  %3703 = vtanh.f32 %v1491_v23  ;;  %v1512_v51 = vadd.f32 %v4566_v4, %v3102_v41 }
 0x18f   :  { %v3680_v26 = vpop.eup %3679  ;;  %2558 = vst.msk [vmem:[%s5194_s3 + $0x8c] sm:$0xf] %vm2522_vm3, %v2877_v13  ;;  %v2875_v24 = vpack.c.bf16 %v2295_v36, %v2295_v36  ;;  %v2300_v34 = vadd.f32 %v3678_v45, %v4827_v49  ;;  %3705 = vtanh.f32 %v1907_v0  ;;  %v1928_v15 = vadd.f32 %v4566_v4, %v3206_v21  ;;  %v1503_v44 = vpop.f32.mrf.mxu0 }
 0x190   :  { %v1919_v47 = vpop.f32.mrf.mxu1  ;;  %v3682_v37 = vpop.eup %3681  ;;  %2530 = vst.msk [vmem:[%s5194_s3 + $0x1c] sm:$0xf] %vm2522_vm3, %v2849_v59  ;;  %v2854_v8 = vpack.c.bf16 %v2274_v60, %v2274_v60  ;;  %v2272_v62 = vadd.f32 %v3680_v26, %v4769_v42  ;;  %3707 = vtanh.f32 %v1512_v51  ;;  %v1504_v61 = vadd.f32 %v4566_v4, %v1503_v44 }
 0x191   :  { %v3684_v48 = vpop.eup %3683  ;;  %2556 = vst.msk [vmem:[%s5194_s3 + $0x84] sm:$0xf] %vm2522_vm3, %v2875_v24  ;;  %v2880_v49 = vpack.c.bf16 %v2300_v34, %v2300_v34  ;;  %v2298_v7 = vadd.f32 %v3682_v37, %v4777_v28  ;;  %3709 = vtanh.f32 %v1928_v15  ;;  %v1920_v54 = vadd.f32 %v4566_v4, %v1919_v47  ;;  %v3103_v19 = vpop.f32.mrf.mxu0 }
 0x192   :  { %v3207_v43 = vpop.f32.mrf.mxu1  ;;  %v3686_v32 = vpop.eup %3685  ;;  %2535 = vst.msk [vmem:[%s5194_s3 + $0x30] sm:$0xf] %vm2522_vm3, %v2854_v8  ;;  %v2852_v42 = vpack.c.bf16 %v2272_v62, %v2272_v62  ;;  %v2275_v63 = vadd.f32 %v3684_v48, %v4847_v18  ;;  %3711 = vtanh.f32 %v1504_v61  ;;  %v1515_v55 = vadd.f32 %v4566_v4, %v3103_v19 }
 0x193   :  { %v3688_v5 = vpop.eup %3687  ;;  %2561 = vst.msk [vmem:[%s5194_s3 + $0x98] sm:$0xf] %vm2522_vm3, %v2880_v49  ;;  %v2878_v28 = vpack.c.bf16 %v2298_v7, %v2298_v7  ;;  %v2301_v3 = vadd.f32 %v3686_v32, %v4852_v58  ;;  %3713 = vtanh.f32 %v1920_v54  ;;  %v1931_v14 = vadd.f32 %v4566_v4, %v3207_v43  ;;  %v1506_v11 = vpop.f32.mrf.mxu0 }
 0x194   :  { %v1922_v12 = vpop.f32.mrf.mxu1  ;;  %v3690_v17 = vpop.eup %3689  ;;  %2533 = vst.msk [vmem:[%s5194_s3 + $0x28] sm:$0xf] %vm2522_vm3, %v2852_v42  ;;  %v2855_v18 = vpack.c.bf16 %v2275_v63, %v2275_v63  ;;  %v2273_v23 = vadd.f32 %v3688_v5, %v4791_v10  ;;  %3715 = vtanh.f32 %v1515_v55  ;;  %v1507_v27 = vadd.f32 %v4566_v4, %v1506_v11 }
 0x195   :  { %v3692_v13 = vpop.eup %3691  ;;  %2559 = vst.msk [vmem:[%s5194_s3 + $0x90] sm:$0xf] %vm2522_vm3, %v2878_v28  ;;  %v2881_v58 = vpack.c.bf16 %v2301_v3, %v2301_v3  ;;  %v2299_v36 = vadd.f32 %v3690_v17, %v4799_v40  ;;  %3717 = vtanh.f32 %v1931_v14  ;;  %v1923_v0 = vadd.f32 %v4566_v4, %v1922_v12  ;;  %v3106_v41 = vpop.f32.mrf.mxu0 }
 0x196   :  { %v3210_v21 = vpop.f32.mrf.mxu1  ;;  %v3694_v45 = vpop.eup %3693  ;;  %2536 = vst.msk [vmem:[%s5194_s3 + $0x34] sm:$0xf] %vm2522_vm3, %v2855_v18  ;;  %v2853_v10 = vpack.c.bf16 %v2273_v23, %v2273_v23  ;;  %v2278_v59 = vadd.f32 %v3692_v13, %v4866_v31  ;;  %3719 = vtanh.f32 %v1507_v27  ;;  %v1528_v60 = vadd.f32 %v4566_v4, %v3106_v41  ;;  %v5256_v18 = vld [vmem:[#allocation17_spill] sm:$0xff] }
 0x197   :  { %v3696_v51 = vpop.eup %3695  ;;  %2562 = vst.msk [vmem:[%s5194_s3 + $0x9c] sm:$0xf] %vm2522_vm3, %v2881_v58  ;;  %v2879_v40 = vpack.c.bf16 %v2299_v36, %v2299_v36  ;;  %v2304_v26 = vadd.f32 %v3694_v45, %v4870_v52  ;;  %3721 = vtanh.f32 %v1923_v0  ;;  %v1944_v24 = vadd.f32 %v4566_v4, %v3210_v21  ;;  %v1519_v34 = vpop.f32.mrf.mxu0  ;;  %v5257_v23 = vld [vmem:[#allocation37_spill] sm:$0xff]  ;;  %v5258_v36 = vld [vmem:[#allocation18_spill] sm:$0xff]  ;;  %v5260_v45 = vld [vmem:[#allocation19_spill] sm:$0xff] }
 0x198   :  { %v1935_v15 = vpop.f32.mrf.mxu1  ;;  %v3698_v44 = vpop.eup %3697  ;;  %2534 = vst.msk [vmem:[%s5194_s3 + $0x2c] sm:$0xf] %vm2522_vm3, %v2853_v10  ;;  %v2858_v31 = vpack.c.bf16 %v2278_v59, %v2278_v59  ;;  %v2276_v47 = vadd.f32 %v3696_v51, %v4813_v35  ;;  %3723 = vtanh.f32 %v1528_v60  ;;  %v1520_v37 = vadd.f32 %v4566_v4, %v1519_v34  ;;  %v5259_v0 = vld [vmem:[#allocation38_spill] sm:$0xff]  ;;  %v5261_v51 = vld [vmem:[#allocation20_spill] sm:$0xff] }
 0x199   :  { %v3700_v8 = vpop.eup %3699  ;;  %2560 = vst.msk [vmem:[%s5194_s3 + $0x94] sm:$0xf] %vm2522_vm3, %v2879_v40  ;;  %v2884_v52 = vpack.c.bf16 %v2304_v26, %v2304_v26  ;;  %v2302_v62 = vadd.f32 %v3698_v44, %v4819_v38  ;;  %3725 = vtanh.f32 %v1944_v24  ;;  %v1936_v61 = vadd.f32 %v4566_v4, %v1935_v15  ;;  %v3107_v48 = vpop.f32.mrf.mxu0 }
 0x19a   :  { %v3211_v49 = vpop.f32.mrf.mxu1  ;;  %v3702_v7 = vpop.eup %3701  ;;  %2539 = vst.msk [vmem:[%s5194_s3 + $0x40] sm:$0xf] %vm2522_vm3, %v2858_v31  ;;  %v2856_v35 = vpack.c.bf16 %v2276_v47, %v2276_v47  ;;  %v2279_v54 = vadd.f32 %v3700_v8, %v4881_v6  ;;  %3727 = vtanh.f32 %v1520_v37  ;;  %v1531_v19 = vadd.f32 %v4566_v4, %v3107_v48 }
 0x19b   :  { %v3704_v43 = vpop.eup %3703  ;;  %2565 = vst.msk [vmem:[%s5194_s3 + $0xa8] sm:$0xf] %vm2522_vm3, %v2884_v52  ;;  %v2882_v38 = vpack.c.bf16 %v2302_v62, %v2302_v62  ;;  %v2305_v32 = vadd.f32 %v3702_v7, %v4886_v46  ;;  %3729 = vtanh.f32 %v1936_v61  ;;  %v1947_v42 = vadd.f32 %v4566_v4, %v3211_v49  ;;  %v1522_v63 = vpop.f32.mrf.mxu0 }
 0x19c   :  { %v1938_v55 = vpop.f32.mrf.mxu1  ;;  %v3706_v5 = vpop.eup %3705  ;;  %2537 = vst.msk [vmem:[%s5194_s3 + $0x38] sm:$0xf] %vm2522_vm3, %v2856_v35  ;;  %v2859_v6 = vpack.c.bf16 %v2279_v54, %v2279_v54  ;;  %v2277_v28 = vadd.f32 %v3704_v43, %v4836_v33  ;;  %3731 = vtanh.f32 %v1531_v19  ;;  %v1523_v3 = vadd.f32 %v4566_v4, %v1522_v63 }
 0x19d   :  { %v3708_v14 = vpop.eup %3707  ;;  %2563 = vst.msk [vmem:[%s5194_s3 + $0xa0] sm:$0xf] %vm2522_vm3, %v2882_v38  ;;  %v2885_v46 = vpack.c.bf16 %v2305_v32, %v2305_v32  ;;  %v2303_v11 = vadd.f32 %v3706_v5, %v4840_v9  ;;  %3733 = vtanh.f32 %v1947_v42  ;;  %v1939_v12 = vadd.f32 %v4566_v4, %v1938_v55 }
 0x19e   :  { %v3710_v17 = vpop.eup %3709  ;;  %v2228_v27 = vadd.f32 %v5257_v23, %v5256_v18  ;;  %2540 = vst.msk [vmem:[%s5194_s3 + $0x44] sm:$0xf] %vm2522_vm3, %v2859_v6  ;;  %v2857_v33 = vpack.c.bf16 %v2277_v28, %v2277_v28  ;;  %v2282_v13 = vadd.f32 %v3708_v14, %v4898_v39  ;;  %3735 = vtanh.f32 %v1523_v3 }
 0x19f   :  { %v3712_v58 = vpop.eup %3711  ;;  %v2254_v9 = vadd.f32 %v5259_v0, %v5258_v36  ;;  %2566 = vst.msk [vmem:[%s5194_s3 + $0xac] sm:$0xf] %vm2522_vm3, %v2885_v46  ;;  %v2883_v4 = vpack.c.bf16 %v2303_v11, %v2303_v11  ;;  %v2308_v41 = vadd.f32 %v3710_v17, %v4902_v1  ;;  %3737 = vtanh.f32 %v1939_v12 }
 0x1a0   :  { %v3714_v21 = vpop.eup %3713  ;;  %v2231_v10 = vadd.f32 %v4795_v22, %v5260_v45  ;;  %2538 = vst.msk [vmem:[%s5194_s3 + $0x3c] sm:$0xf] %vm2522_vm3, %v2857_v33  ;;  %v2862_v39 = vpack.c.bf16 %v2282_v13, %v2282_v13  ;;  %v2280_v59 = vadd.f32 %v3712_v58, %v2228_v27  ;;  %v2257_v40 = vadd.f32 %v4809_v56, %v5261_v51  ;;  %v5262_v22 = vld [vmem:[#allocation21_spill] sm:$0xff]  ;;  %v5263_v56 = vld [vmem:[#allocation22_spill] sm:$0xff] }
 0x1a1   :  { %v3716_v60 = vpop.eup %3715  ;;  %2564 = vst.msk [vmem:[%s5194_s3 + $0xa4] sm:$0xf] %vm2522_vm3, %v2883_v4  ;;  %v2888_v1 = vpack.c.bf16 %v2308_v41, %v2308_v41  ;;  %v2306_v26 = vadd.f32 %v3714_v21, %v2254_v9  ;;  %v2229_v34 = vadd.f32 %v4685_v16, %v5262_v22  ;;  %v2255_v47 = vadd.f32 %v4699_v30, %v5263_v56  ;;  %v5264_v16 = vld [vmem:[#allocation23_spill] sm:$0xff]  ;;  %v5265_v30 = vld [vmem:[#allocation24_spill] sm:$0xff]  ;;  %v5272_v58 = vld [vmem:[#allocation2_spill] sm:$0xff] }
 0x1a2   :  { %v3718_v24 = vpop.eup %3717  ;;  %2543 = vst.msk [vmem:[%s5194_s3 + $0x50] sm:$0xf] %vm2522_vm3, %v2862_v39  ;;  %v2860_v15 = vpack.c.bf16 %v2280_v59, %v2280_v59  ;;  %v2283_v44 = vadd.f32 %v3716_v60, %v2231_v10  ;;  %v2234_v62 = vadd.f32 %v4832_v53, %v5264_v16  ;;  %v2260_v7 = vadd.f32 %v4843_v57, %v5265_v30  ;;  %v5266_v53 = vld [vmem:[#allocation25_spill] sm:$0xff]  ;;  %v5267_v57 = vld [vmem:[#allocation26_spill] sm:$0xff] }
 0x1a3   :  { %v3720_v31 = vpop.eup %3719  ;;  %2569 = vst.msk [vmem:[%s5194_s3 + $0xb8] sm:$0xf] %vm2522_vm3, %v2888_v1  ;;  %v2886_v37 = vpack.c.bf16 %v2306_v26, %v2306_v26  ;;  %v2309_v8 = vadd.f32 %v3718_v24, %v2257_v40  ;;  %v2232_v43 = vadd.f32 %v4729_v2, %v5266_v53  ;;  %v2258_v63 = vadd.f32 %v4743_v50, %v5267_v57  ;;  %v5268_v2 = vld [vmem:[#allocation27_spill] sm:$0xff]  ;;  %v5269_v50 = vld [vmem:[#allocation28_spill] sm:$0xff] }
 0x1a4   :  { %v3722_v52 = vpop.eup %3721  ;;  %2541 = vst.msk [vmem:[%s5194_s3 + $0x48] sm:$0xf] %vm2522_vm3, %v2860_v15  ;;  %v2863_v61 = vpack.c.bf16 %v2283_v44, %v2283_v44  ;;  %v2281_v48 = vadd.f32 %v3720_v31, %v2229_v34  ;;  %v2235_v28 = vadd.f32 %v4862_v25, %v5268_v2  ;;  %v2261_v11 = vadd.f32 %v4877_v20, %v5269_v50  ;;  %v5270_v25 = vld [vmem:[#allocation29_spill] sm:$0xff]  ;;  %v5271_v20 = vld [vmem:[#allocation30_spill] sm:$0xff] }
 0x1a5   :  { %v3724_v49 = vpop.eup %3723  ;;  %2567 = vst.msk [vmem:[%s5194_s3 + $0xb0] sm:$0xf] %vm2522_vm3, %v2886_v37  ;;  %v2889_v35 = vpack.c.bf16 %v2309_v8, %v2309_v8  ;;  %v2307_v54 = vadd.f32 %v3722_v52, %v2255_v47  ;;  %v2233_v23 = vadd.f32 %v4773_v29, %v5270_v25  ;;  %v2259_v36 = vadd.f32 %v5272_v58, %v5271_v20 }
 0x1a6   :  { %v3726_v19 = vpop.eup %3725  ;;  %2544 = vst.msk [vmem:[%s5194_s3 + $0x54] sm:$0xf] %vm2522_vm3, %v2863_v61  ;;  %v2861_v38 = vpack.c.bf16 %v2281_v48, %v2281_v48  ;;  %v2286_v32 = vadd.f32 %v3724_v49, %v2234_v62 }
 0x1a7   :  { %v3728_v42 = vpop.eup %3727  ;;  %2570 = vst.msk [vmem:[%s5194_s3 + $0xbc] sm:$0xf] %vm2522_vm3, %v2889_v35  ;;  %v2887_v55 = vpack.c.bf16 %v2307_v54, %v2307_v54  ;;  %v2312_v5 = vadd.f32 %v3726_v19, %v2260_v7 }
 0x1a8   :  { %v3730_v6 = vpop.eup %3729  ;;  %2542 = vst.msk [vmem:[%s5194_s3 + $0x4c] sm:$0xf] %vm2522_vm3, %v2861_v38  ;;  %v2866_v3 = vpack.c.bf16 %v2286_v32, %v2286_v32  ;;  %v2284_v14 = vadd.f32 %v3728_v42, %v2232_v43 }
 0x1a9   :  { %v3732_v46 = vpop.eup %3731  ;;  %2568 = vst.msk [vmem:[%s5194_s3 + $0xb4] sm:$0xf] %vm2522_vm3, %v2887_v55  ;;  %v2892_v12 = vpack.c.bf16 %v2312_v5, %v2312_v5  ;;  %v2310_v17 = vadd.f32 %v3730_v6, %v2258_v63 }
 0x1aa   :  { %v3734_v18 = vpop.eup %3733  ;;  %2547 = vst.msk [vmem:[%s5194_s3 + $0x60] sm:$0xf] %vm2522_vm3, %v2866_v3  ;;  %v2864_v27 = vpack.c.bf16 %v2284_v14, %v2284_v14  ;;  %v2287_v33 = vadd.f32 %v3732_v46, %v2235_v28 }
 0x1ab   :  { %v3736_v13 = vpop.eup %3735  ;;  %2573 = vst.msk [vmem:[%s5194_s3 + $0xc8] sm:$0xf] %vm2522_vm3, %v2892_v12  ;;  %v2890_v0 = vpack.c.bf16 %v2310_v17, %v2310_v17  ;;  %v2313_v9 = vadd.f32 %v3734_v18, %v2261_v11 }
 0x1ac   :  { %v3738_v4 = vpop.eup %3737  ;;  %2545 = vst.msk [vmem:[%s5194_s3 + $0x58] sm:$0xf] %vm2522_vm3, %v2864_v27  ;;  %v2867_v29 = vpack.c.bf16 %v2287_v33, %v2287_v33  ;;  %v2285_v41 = vadd.f32 %v3736_v13, %v2233_v23 }
 0x1ad   :  { %2571 = vst.msk [vmem:[%s5194_s3 + $0xc0] sm:$0xf] %vm2522_vm3, %v2890_v0  ;;  %v2893_v21 = vpack.c.bf16 %v2313_v9, %v2313_v9  ;;  %v2311_v45 = vadd.f32 %v3738_v4, %v2259_v36 }
 0x1ae   :  { %2548 = vst.msk [vmem:[%s5194_s3 + $0x64] sm:$0xf] %vm2522_vm3, %v2867_v29  ;;  %v2865_v10 = vpack.c.bf16 %v2285_v41, %v2285_v41 }
 0x1af   :  { %2574 = vst.msk [vmem:[%s5194_s3 + $0xcc] sm:$0xf] %vm2522_vm3, %v2893_v21  ;;  %v2891_v39 = vpack.c.bf16 %v2311_v45, %v2311_v45 }
 0x1b0   :  { %2546 = vst.msk [vmem:[%s5194_s3 + $0x5c] sm:$0xf] %vm2522_vm3, %v2865_v10 }
 0x1b1   :  { %2572 = vst.msk [vmem:[%s5194_s3 + $0xc4] sm:$0xf] %vm2522_vm3, %v2891_v39 }

// kernel: lenet5_forward.4
= control target key start
LH: loop header
LB: loop body
LE: loop exit
PB: predicated region body
PF: predicated region fallthrough
CT: control target
= control target key end

     0   :  { %v807_v0 = vmov 0   ;;  %vm274_vm0 = vcmask 179200   ;;  %vm323_vm1 = vcmask 1042432   ;;  %vm576_vm2 = vcmask 125952   ;;  %s1063_s1 = inlined_call_operand.vmem [shape: bf16[150,16], index: 1, kind: input, shape index: {}]   ;;  %s1064_s0 = inlined_call_operand.vmem [shape: bf16[256,150], index: 0, kind: input, shape index: {}]   ;;  %s1065_s2 = inlined_call_operand.vmem [shape: f32[1,16], index: 2, kind: input, shape index: {}]   ;;  %s1066_s3 = inlined_call_operand.vmem [shape: bf16[2,32,16], index: 3, kind: output, shape index: {}]  }
   0x1   :  { %327 = vmatprep.subr.bf16.mxu0 %v807_v0  ;;  %664 = vmatprep.subr.bf16.mxu1 %v807_v0  ;;  %v685_v1 = vld [vmem:[%s1063_s1 + $0x38] sm:$0xff]   ;;  %v686_v2 = vld [vmem:[%s1063_s1 + $0x30] sm:$0xff]   ;;  %v687_v3 = vld [vmem:[%s1063_s1 + $0x28] sm:$0xff]  }
   0x2   :  { %328 = vmatpush1.bf16.msra.mxu0 %v685_v1  ;;  %674 = vmatpush1.bf16.msra.mxu1 %v685_v1  ;;  %v688_v4 = vld [vmem:[%s1063_s1 + $0x20] sm:$0xff]   ;;  %v689_v7 = vld [vmem:[%s1063_s1 + $0x18] sm:$0xff]   ;;  %v690_v8 = vld [vmem:[%s1063_s1 + $0x10] sm:$0xff]  }
   0x3   :  { %329 = vmatprep.subr.bf16.mxu0 %v807_v0  ;;  %665 = vmatprep.subr.bf16.mxu1 %v807_v0  ;;  %v697_v5 = vld [vmem:[%s1064_s0 + $0x4] ss:$8 sps:$4 sm:$0xff]   ;;  %v693_v11 = vld [vmem:[%s1063_s1 + $0x48] ss:$0 sps:$4 sm:$0x77]  }
   0x4   :  { %632 = vmatprep.mubr.msk.bf16.mxu0 %vm274_vm0, %v697_v5  ;;  %v700_v6 = vld [vmem:[%s1064_s0 + $0x84] ss:$8 sps:$4 sm:$0xff]   ;;  %v325_v12 = vsel %vm323_vm1, %v693_v11, 0  ;;  %v695_v14 = vld [vmem:[%s1064_s0] ss:$8 sps:$4 sm:$0xff]  }
   0x5   :  { %640 = vmatprep.mubr.msk.bf16.mxu1 %vm274_vm0, %v700_v6  ;;  %v691_v9 = vld [vmem:[%s1063_s1 + $0x8] sm:$0xff]   ;;  %v692_v10 = vld [vmem:[%s1063_s1] sm:$0xff]   ;;  %v701_v16 = vld [vmem:[%s1064_s0 + $0x14] ss:$8 sps:$4 sm:$0xff]  }
   0x6   :  { %330 = vmatpush1.bf16.msra.mxu0 %v686_v2  ;;  %675 = vmatpush1.bf16.msra.mxu1 %v686_v2  ;;  %v694_v13 = vld [vmem:[%s1063_s1 + $0x40] sm:$0xff]   ;;  %v703_v17 = vld [vmem:[%s1064_s0 + $0x94] ss:$8 sps:$4 sm:$0xff]   ;;  %v705_v18 = vld [vmem:[%s1064_s0 + $0x10] ss:$8 sps:$4 sm:$0xff]  }
   0x7   :  { %331 = vmatprep.subr.bf16.mxu0 %v807_v0  ;;  %666 = vmatprep.subr.bf16.mxu1 %v807_v0  ;;  %v698_v15 = vld [vmem:[%s1064_s0 + $0x80] ss:$8 sps:$4 sm:$0xff]   ;;  %v706_v19 = vld [vmem:[%s1064_s0 + $0x90] ss:$8 sps:$4 sm:$0xff]   ;;  %v707_v20 = vld [vmem:[%s1064_s0 + $0x24] ss:$8 sps:$4 sm:$0xff]  }
   0x8   :  { %v709_v21 = vld [vmem:[%s1064_s0 + $0xa4] ss:$8 sps:$4 sm:$0xff]   ;;  %v711_v22 = vld [vmem:[%s1064_s0 + $0x20] ss:$8 sps:$4 sm:$0xff]   ;;  %v713_v24 = vld [vmem:[%s1064_s0 + $0x34] ss:$8 sps:$4 sm:$0xff]  }
   0x9   :  { %v712_v23 = vld [vmem:[%s1064_s0 + $0xa0] ss:$8 sps:$4 sm:$0xff]   ;;  %v715_v25 = vld [vmem:[%s1064_s0 + $0xb4] ss:$8 sps:$4 sm:$0xff]   ;;  %v717_v26 = vld [vmem:[%s1064_s0 + $0x30] ss:$8 sps:$4 sm:$0xff]  }
   0xa   :  { %332 = vmatpush1.bf16.msra.mxu0 %v687_v3  ;;  %676 = vmatpush1.bf16.msra.mxu1 %v687_v3  ;;  %v718_v27 = vld [vmem:[%s1064_s0 + $0xb0] ss:$8 sps:$4 sm:$0xff]   ;;  %v719_v28 = vld [vmem:[%s1064_s0 + $0x44] ss:$8 sps:$4 sm:$0xff]   ;;  %v723_v30 = vld [vmem:[%s1064_s0 + $0x40] ss:$8 sps:$4 sm:$0xff]  }
   0xb   :  { %333 = vmatprep.subr.bf16.mxu0 %v807_v0  ;;  %667 = vmatprep.subr.bf16.mxu1 %v807_v0  ;;  %v721_v29 = vld [vmem:[%s1064_s0 + $0xc4] ss:$8 sps:$4 sm:$0xff]   ;;  %v724_v31 = vld [vmem:[%s1064_s0 + $0xc0] ss:$8 sps:$4 sm:$0xff]   ;;  %v725_v32 = vld [vmem:[%s1064_s0 + $0x54] ss:$8 sps:$4 sm:$0xff]  }
   0xc   :  { %v727_v33 = vld [vmem:[%s1064_s0 + $0xd4] ss:$8 sps:$4 sm:$0xff]   ;;  %v729_v34 = vld [vmem:[%s1064_s0 + $0x50] ss:$8 sps:$4 sm:$0xff]   ;;  %v731_v36 = vld [vmem:[%s1064_s0 + $0x64] ss:$8 sps:$4 sm:$0xff]  }
   0xd   :  { %v730_v35 = vld [vmem:[%s1064_s0 + $0xd0] ss:$8 sps:$4 sm:$0xff]   ;;  %v733_v37 = vld [vmem:[%s1064_s0 + $0xe4] ss:$8 sps:$4 sm:$0xff]   ;;  %v735_v38 = vld [vmem:[%s1064_s0 + $0x60] ss:$8 sps:$4 sm:$0xff]  }
   0xe   :  { %334 = vmatpush1.bf16.msra.mxu0 %v688_v4  ;;  %677 = vmatpush1.bf16.msra.mxu1 %v688_v4  ;;  %v736_v39 = vld [vmem:[%s1064_s0 + $0xe0] ss:$8 sps:$4 sm:$0xff]   ;;  %v737_v40 = vld [vmem:[%s1064_s0 + $0x74] ss:$8 sps:$4 sm:$0xff]   ;;  %v741_v42 = vld [vmem:[%s1064_s0 + $0x70] ss:$8 sps:$4 sm:$0xff]  }
   0xf   :  { %335 = vmatprep.subr.bf16.mxu0 %v807_v0  ;;  %668 = vmatprep.subr.bf16.mxu1 %v807_v0  ;;  %v739_v41 = vld [vmem:[%s1064_s0 + $0xf4] ss:$8 sps:$4 sm:$0xff]   ;;  %v742_v43 = vld [vmem:[%s1064_s0 + $0xf0] ss:$8 sps:$4 sm:$0xff]   ;;  %v973_v4 = vld [vmem:[%s1065_s2] ss:$0 sm:$0xff] }
  0x12   :  { %336 = vmatpush1.bf16.msra.mxu0 %v689_v7  ;;  %678 = vmatpush1.bf16.msra.mxu1 %v689_v7 }
  0x13   :  { %337 = vmatprep.subr.bf16.mxu0 %v807_v0  ;;  %669 = vmatprep.subr.bf16.mxu1 %v807_v0 }
  0x16   :  { %338 = vmatpush1.bf16.msra.mxu0 %v690_v8  ;;  %679 = vmatpush1.bf16.msra.mxu1 %v690_v8 }
  0x17   :  { %339 = vmatprep.subr.bf16.mxu0 %v807_v0  ;;  %670 = vmatprep.subr.bf16.mxu1 %v807_v0 }
  0x1a   :  { %340 = vmatpush1.bf16.msra.mxu0 %v691_v9  ;;  %680 = vmatpush1.bf16.msra.mxu1 %v691_v9 }
  0x1b   :  { %341 = vmatprep.subr.bf16.mxu0 %v807_v0  ;;  %671 = vmatprep.subr.bf16.mxu1 %v807_v0 }
  0x1e   :  { %342 = vmatpush1.bf16.msra.mxu0 %v692_v10  ;;  %681 = vmatpush1.bf16.msra.mxu1 %v692_v10 }
  0x1f   :  { %355 = vmatprep.subr.bf16.mxu0 %v807_v0  ;;  %672 = vmatprep.subr.bf16.mxu1 %v807_v0 }
  0x22   :  { %356 = vmatpush2.bf16.msra.mxu0 %v325_v12  ;;  %682 = vmatpush2.bf16.msra.mxu1 %v325_v12 }
  0x23   :  { %357 = vmatprep.subr.bf16.mxu0 %v807_v0  ;;  %673 = vmatprep.subr.bf16.mxu1 %v807_v0 }
  0x26   :  { %358 = vmatpush2.bf16.msra.mxu0 %v694_v13  ;;  %683 = vmatpush2.bf16.msra.mxu1 %v694_v13 }
  0x29   :  { %360 = vmatmul.mubr.bf16.vlgmr.msra.gmra.mxu0 %v695_v14  ;;  %424 = vmatmul.mubr.bf16.vlgmr.msra.gmra.mxu1 %v698_v15 }
  0x2a   :  { %633 = vmatprep.mubr.msk.bf16.mxu0 %vm274_vm0, %v701_v16  ;;  %641 = vmatprep.mubr.msk.bf16.mxu1 %vm274_vm0, %v703_v17 }
  0x31   :  { %368 = vmatmul.mubr.bf16.gmra.mxu0 %v705_v18  ;;  %432 = vmatmul.mubr.bf16.gmra.mxu1 %v706_v19 }
  0x32   :  { %634 = vmatprep.mubr.msk.bf16.mxu0 %vm274_vm0, %v707_v20  ;;  %642 = vmatprep.mubr.msk.bf16.mxu1 %vm274_vm0, %v709_v21 }
  0x39   :  { %376 = vmatmul.mubr.bf16.gmra.mxu0 %v711_v22  ;;  %440 = vmatmul.mubr.bf16.gmra.mxu1 %v712_v23 }
  0x3a   :  { %635 = vmatprep.mubr.msk.bf16.mxu0 %vm274_vm0, %v713_v24  ;;  %643 = vmatprep.mubr.msk.bf16.mxu1 %vm274_vm0, %v715_v25 }
  0x41   :  { %384 = vmatmul.mubr.bf16.gmra.mxu0 %v717_v26  ;;  %448 = vmatmul.mubr.bf16.gmra.mxu1 %v718_v27 }
  0x42   :  { %636 = vmatprep.mubr.msk.bf16.mxu0 %vm274_vm0, %v719_v28  ;;  %644 = vmatprep.mubr.msk.bf16.mxu1 %vm274_vm0, %v721_v29 }
  0x49   :  { %392 = vmatmul.mubr.bf16.gmra.mxu0 %v723_v30  ;;  %456 = vmatmul.mubr.bf16.gmra.mxu1 %v724_v31 }
  0x4a   :  { %637 = vmatprep.mubr.msk.bf16.mxu0 %vm274_vm0, %v725_v32  ;;  %645 = vmatprep.mubr.msk.bf16.mxu1 %vm274_vm0, %v727_v33 }
  0x51   :  { %400 = vmatmul.mubr.bf16.gmra.mxu0 %v729_v34  ;;  %464 = vmatmul.mubr.bf16.gmra.mxu1 %v730_v35 }
  0x52   :  { %638 = vmatprep.mubr.msk.bf16.mxu0 %vm274_vm0, %v731_v36  ;;  %646 = vmatprep.mubr.msk.bf16.mxu1 %vm274_vm0, %v733_v37 }
  0x59   :  { %408 = vmatmul.mubr.bf16.gmra.mxu0 %v735_v38  ;;  %472 = vmatmul.mubr.bf16.gmra.mxu1 %v736_v39 }
  0x5a   :  { %639 = vmatprep.mubr.msk.bf16.mxu0 %vm274_vm0, %v737_v40  ;;  %647 = vmatprep.mubr.msk.bf16.mxu1 %vm274_vm0, %v739_v41 }
  0x61   :  { %416 = vmatmul.mubr.bf16.gmra.mxu0 %v741_v42  ;;  %480 = vmatmul.mubr.bf16.gmra.mxu1 %v742_v43 }
  0xe9   :  { %v361_v44 = vpop.f32.mrf.mxu0  ;;  %v425_v45 = vpop.f32.mrf.mxu1 }
  0xea   :  { %v362_v9 = vadd.f32 %v973_v4, %v361_v44  ;;  %v426_v10 = vadd.f32 %v973_v4, %v425_v45 }
  0xeb   :  { %v363_v46 = vpop.f32.mrf.mxu0  ;;  %v427_v47 = vpop.f32.mrf.mxu1 }
  0xec   :  { %743 = vtanh.f32 %v362_v9 }
  0xed   :  { %v364_v48 = vpop.f32.mrf.mxu0  ;;  %v428_v49 = vpop.f32.mrf.mxu1  ;;  %745 = vtanh.f32 %v426_v10 }
  0xee   :  { %v365_v13 = vadd.f32 %v973_v4, %v364_v48  ;;  %v429_v14 = vadd.f32 %v973_v4, %v428_v49 }
  0xef   :  { %v366_v50 = vpop.f32.mrf.mxu0  ;;  %v430_v51 = vpop.f32.mrf.mxu1 }
  0xf0   :  { %747 = vtanh.f32 %v365_v13 }
  0xf1   :  { %v369_v52 = vpop.f32.mrf.mxu0  ;;  %v433_v53 = vpop.f32.mrf.mxu1  ;;  %749 = vtanh.f32 %v429_v14 }
  0xf2   :  { %v370_v17 = vadd.f32 %v973_v4, %v369_v52  ;;  %v434_v18 = vadd.f32 %v973_v4, %v433_v53 }
  0xf3   :  { %v371_v54 = vpop.f32.mrf.mxu0  ;;  %v435_v55 = vpop.f32.mrf.mxu1 }
  0xf4   :  { %751 = vtanh.f32 %v370_v17 }
  0xf5   :  { %v372_v56 = vpop.f32.mrf.mxu0  ;;  %v436_v57 = vpop.f32.mrf.mxu1  ;;  %753 = vtanh.f32 %v434_v18 }
  0xf6   :  { %v373_v21 = vadd.f32 %v973_v4, %v372_v56  ;;  %v437_v22 = vadd.f32 %v973_v4, %v436_v57 }
  0xf7   :  { %v374_v58 = vpop.f32.mrf.mxu0  ;;  %v438_v59 = vpop.f32.mrf.mxu1 }
  0xf8   :  { %755 = vtanh.f32 %v373_v21 }
  0xf9   :  { %v377_v60 = vpop.f32.mrf.mxu0  ;;  %v441_v61 = vpop.f32.mrf.mxu1  ;;  %757 = vtanh.f32 %v437_v22 }
  0xfa   :  { %v378_v25 = vadd.f32 %v973_v4, %v377_v60  ;;  %v442_v26 = vadd.f32 %v973_v4, %v441_v61  ;;  %v992_v42 = vpop.eup %743 }
  0xfb   :  { %v379_v62 = vpop.f32.mrf.mxu0  ;;  %v443_v63 = vpop.f32.mrf.mxu1 }
  0xfc   :  { %759 = vtanh.f32 %v378_v25  ;;  %v995_v46 = vpop.eup %745 }
  0xfd   :  { %v380_v0 = vpop.f32.mrf.mxu0  ;;  %v444_v1 = vpop.f32.mrf.mxu1  ;;  %761 = vtanh.f32 %v442_v26 }
  0xfe   :  { %v381_v29 = vadd.f32 %v973_v4, %v380_v0  ;;  %v445_v30 = vadd.f32 %v973_v4, %v444_v1  ;;  %v998_v48 = vpop.eup %747 }
  0xff   :  { %v382_v2 = vpop.f32.mrf.mxu0  ;;  %v446_v3 = vpop.f32.mrf.mxu1 }
 0x100   :  { %763 = vtanh.f32 %v381_v29  ;;  %v1001_v52 = vpop.eup %749 }
 0x101   :  { %v385_v5 = vpop.f32.mrf.mxu0  ;;  %v449_v6 = vpop.f32.mrf.mxu1  ;;  %765 = vtanh.f32 %v445_v30 }
 0x102   :  { %v386_v33 = vadd.f32 %v973_v4, %v385_v5  ;;  %v450_v34 = vadd.f32 %v973_v4, %v449_v6  ;;  %v1003_v53 = vpop.eup %751 }
 0x103   :  { %v387_v7 = vpop.f32.mrf.mxu0  ;;  %v451_v8 = vpop.f32.mrf.mxu1 }
 0x104   :  { %767 = vtanh.f32 %v386_v33  ;;  %v1005_v56 = vpop.eup %753 }
 0x105   :  { %v388_v11 = vpop.f32.mrf.mxu0  ;;  %v452_v12 = vpop.f32.mrf.mxu1  ;;  %769 = vtanh.f32 %v450_v34 }
 0x106   :  { %v389_v37 = vadd.f32 %v973_v4, %v388_v11  ;;  %v453_v38 = vadd.f32 %v973_v4, %v452_v12  ;;  %v1010_v60 = vpop.eup %755 }
 0x107   :  { %v390_v15 = vpop.f32.mrf.mxu0  ;;  %v454_v16 = vpop.f32.mrf.mxu1 }
 0x108   :  { %771 = vtanh.f32 %v389_v37  ;;  %v1013_v0 = vpop.eup %757 }
 0x109   :  { %v393_v19 = vpop.f32.mrf.mxu0  ;;  %v457_v20 = vpop.f32.mrf.mxu1  ;;  %773 = vtanh.f32 %v453_v38 }
 0x10a   :  { %v394_v41 = vadd.f32 %v973_v4, %v393_v19  ;;  %v458_v43 = vadd.f32 %v973_v4, %v457_v20  ;;  %v760_v1 = vpop.eup %759 }
 0x10b   :  { %v395_v23 = vpop.f32.mrf.mxu0  ;;  %v459_v24 = vpop.f32.mrf.mxu1 }
 0x10c   :  { %775 = vtanh.f32 %v394_v41  ;;  %v762_v5 = vpop.eup %761 }
 0x10d   :  { %v396_v27 = vpop.f32.mrf.mxu0  ;;  %v460_v28 = vpop.f32.mrf.mxu1  ;;  %777 = vtanh.f32 %v458_v43 }
 0x10e   :  { %v397_v47 = vadd.f32 %v973_v4, %v396_v27  ;;  %v461_v49 = vadd.f32 %v973_v4, %v460_v28  ;;  %v764_v9 = vpop.eup %763  ;;  %v520_v28 = vadd.f32 %v760_v1, %v992_v42 }
 0x10f   :  { %v398_v31 = vpop.f32.mrf.mxu0  ;;  %v462_v32 = vpop.f32.mrf.mxu1 }
 0x110   :  { %779 = vtanh.f32 %v397_v47  ;;  %v766_v13 = vpop.eup %765  ;;  %v524_v32 = vadd.f32 %v762_v5, %v995_v46 }
 0x111   :  { %v401_v35 = vpop.f32.mrf.mxu0  ;;  %v465_v36 = vpop.f32.mrf.mxu1  ;;  %781 = vtanh.f32 %v461_v49  ;;  %v525_v43 = vadd.f32 %v766_v13, %v1001_v52 }
 0x112   :  { %v402_v57 = vadd.f32 %v973_v4, %v401_v35  ;;  %v466_v61 = vadd.f32 %v973_v4, %v465_v36  ;;  %v768_v14 = vpop.eup %767 }
 0x113   :  { %v403_v39 = vpop.f32.mrf.mxu0  ;;  %v467_v40 = vpop.f32.mrf.mxu1 }
 0x114   :  { %v770_v17 = vpop.eup %769  ;;  %v521_v40 = vadd.f32 %v764_v9, %v998_v48 }
 0x115   :  { %v404_v44 = vpop.f32.mrf.mxu0  ;;  %v468_v45 = vpop.f32.mrf.mxu1  ;;  %v526_v52 = vadd.f32 %v770_v17, %v1005_v56 }
 0x116   :  { %v405_v6 = vadd.f32 %v973_v4, %v404_v44  ;;  %v469_v10 = vadd.f32 %v973_v4, %v468_v45  ;;  %v772_v20 = vpop.eup %771 }
 0x117   :  { %v406_v50 = vpop.f32.mrf.mxu0  ;;  %v470_v51 = vpop.f32.mrf.mxu1 }
 0x118   :  { %v774_v23 = vpop.eup %773 }
 0x119   :  { %v409_v54 = vpop.f32.mrf.mxu0  ;;  %v473_v55 = vpop.f32.mrf.mxu1 }
 0x11a   :  { %v410_v58 = vadd.f32 %v973_v4, %v409_v54  ;;  %v474_v59 = vadd.f32 %v973_v4, %v473_v55  ;;  %v776_v24 = vpop.eup %775  ;;  %v522_v54 = vadd.f32 %v768_v14, %v1003_v53 }
 0x11b   :  { %v411_v62 = vpop.f32.mrf.mxu0  ;;  %v475_v63 = vpop.f32.mrf.mxu1  ;;  %v528_v36 = vadd.f32 %v776_v24, %v520_v28 }
 0x11c   :  { %783 = vtanh.f32 %v410_v58  ;;  %v778_v27 = vpop.eup %777 }
 0x11d   :  { %785 = vtanh.f32 %v474_v59  ;;  %v412_v2 = vpop.f32.mrf.mxu0  ;;  %v476_v3 = vpop.f32.mrf.mxu1  ;;  %v532_v38 = vadd.f32 %v778_v27, %v524_v32 }
 0x11e   :  { %787 = vtanh.f32 %v402_v57  ;;  %v413_v7 = vadd.f32 %v973_v4, %v412_v2  ;;  %v477_v8 = vadd.f32 %v973_v4, %v476_v3  ;;  %v780_v31 = vpop.eup %779  ;;  %v523_v2 = vadd.f32 %v772_v20, %v1010_v60 }
 0x11f   :  { %789 = vtanh.f32 %v466_v61  ;;  %v414_v11 = vpop.f32.mrf.mxu0  ;;  %v478_v12 = vpop.f32.mrf.mxu1  ;;  %v529_v45 = vadd.f32 %v780_v31, %v521_v40  ;;  %v527_v3 = vadd.f32 %v774_v23, %v1013_v0 }
 0x120   :  { %791 = vtanh.f32 %v413_v7  ;;  %v782_v35 = vpop.eup %781 }
 0x121   :  { %793 = vtanh.f32 %v477_v8  ;;  %v417_v15 = vpop.f32.mrf.mxu0  ;;  %v481_v16 = vpop.f32.mrf.mxu1  ;;  %v533_v49 = vadd.f32 %v782_v35, %v525_v43 }
 0x122   :  { %795 = vtanh.f32 %v405_v6  ;;  %v418_v18 = vadd.f32 %v973_v4, %v417_v15  ;;  %v482_v19 = vadd.f32 %v973_v4, %v481_v16 }
 0x123   :  { %797 = vtanh.f32 %v469_v10  ;;  %v419_v21 = vpop.f32.mrf.mxu0  ;;  %v483_v22 = vpop.f32.mrf.mxu1 }
 0x124   :  { %799 = vtanh.f32 %v418_v18 }
 0x125   :  { %801 = vtanh.f32 %v482_v19  ;;  %v420_v25 = vpop.f32.mrf.mxu0  ;;  %v484_v26 = vpop.f32.mrf.mxu1 }
 0x126   :  { %v421_v29 = vadd.f32 %v973_v4, %v420_v25  ;;  %v485_v30 = vadd.f32 %v973_v4, %v484_v26 }
 0x127   :  { %v422_v33 = vpop.f32.mrf.mxu0  ;;  %v486_v34 = vpop.f32.mrf.mxu1 }
 0x128   :  { %803 = vtanh.f32 %v421_v29 }
 0x129   :  { %v784_v37 = vpop.eup %783  ;;  %805 = vtanh.f32 %v485_v30 }
 0x12a   :  { %v786_v39 = vpop.eup %785  ;;  %v536_v41 = vadd.f32 %v784_v37, %v528_v36 }
 0x12b   :  { %v788_v42 = vpop.eup %787  ;;  %v540_v4 = vadd.f32 %v786_v39, %v532_v38 }
 0x12c   :  { %v790_v44 = vpop.eup %789  ;;  %v656_v46 = vpack.c.bf16 %v536_v41, %v536_v41  ;;  %v530_v59 = vadd.f32 %v788_v42, %v522_v54 }
 0x12d   :  { %v792_v47 = vpop.eup %791  ;;  %v660_v50 = vpack.c.bf16 %v540_v4, %v540_v4  ;;  %v534_v53 = vadd.f32 %v790_v44, %v526_v52 }
 0x12e   :  { %v794_v51 = vpop.eup %793  ;;  %577 = vst.msk [vmem:[%s1066_s3] sm:$0xf] %vm576_vm2, %v656_v46  ;;  %v537_v48 = vadd.f32 %v792_v47, %v529_v45 }
 0x12f   :  { %v796_v55 = vpop.eup %795  ;;  %581 = vst.msk [vmem:[%s1066_s3 + $0x10] sm:$0xf] %vm576_vm2, %v660_v50  ;;  %v541_v57 = vadd.f32 %v794_v51, %v533_v49 }
 0x130   :  { %v798_v58 = vpop.eup %797  ;;  %v657_v61 = vpack.c.bf16 %v537_v48, %v537_v48  ;;  %v531_v6 = vadd.f32 %v796_v55, %v523_v2 }
 0x131   :  { %v800_v62 = vpop.eup %799  ;;  %v661_v63 = vpack.c.bf16 %v541_v57, %v541_v57  ;;  %v535_v9 = vadd.f32 %v798_v58, %v527_v3 }
 0x132   :  { %v802_v1 = vpop.eup %801  ;;  %578 = vst.msk [vmem:[%s1066_s3 + $0x4] sm:$0xf] %vm576_vm2, %v657_v61  ;;  %v538_v56 = vadd.f32 %v800_v62, %v530_v59 }
 0x133   :  { %582 = vst.msk [vmem:[%s1066_s3 + $0x14] sm:$0xf] %vm576_vm2, %v661_v63  ;;  %v542_v5 = vadd.f32 %v802_v1, %v534_v53 }
 0x134   :  { %v658_v7 = vpack.c.bf16 %v538_v56, %v538_v56 }
 0x135   :  { %v804_v8 = vpop.eup %803  ;;  %v662_v10 = vpack.c.bf16 %v542_v5, %v542_v5 }
 0x136   :  { %v806_v60 = vpop.eup %805  ;;  %579 = vst.msk [vmem:[%s1066_s3 + $0x8] sm:$0xf] %vm576_vm2, %v658_v7  ;;  %v539_v11 = vadd.f32 %v804_v8, %v531_v6 }
 0x137   :  { %583 = vst.msk [vmem:[%s1066_s3 + $0x18] sm:$0xf] %vm576_vm2, %v662_v10  ;;  %v543_v0 = vadd.f32 %v806_v60, %v535_v9 }
 0x138   :  { %v659_v12 = vpack.c.bf16 %v539_v11, %v539_v11 }
 0x139   :  { %v663_v13 = vpack.c.bf16 %v543_v0, %v543_v0 }
 0x13a   :  { %580 = vst.msk [vmem:[%s1066_s3 + $0xc] sm:$0xf] %vm576_vm2, %v659_v12 }
 0x13b   :  { %584 = vst.msk [vmem:[%s1066_s3 + $0x1c] sm:$0xf] %vm576_vm2, %v663_v13 }

// kernel: lenet5_forward.5
= control target key start
LH: loop header
LB: loop body
LE: loop exit
PB: predicated region body
PF: predicated region fallthrough
CT: control target
= control target key end

     0   :  { %v772_v1 = vmov 0   ;;  %v98_v18 = vlaneseq  ;;  %v773_v26 = vmov 1966171168   ;;  %vm264_vm0 = vcmask 130048   ;;  %s975_s0 = inlined_call_operand.vmem [shape: bf16[2,400], index: 0, kind: input, shape index: {}]   ;;  %s976_s1 = inlined_call_operand.vmem [shape: bf16[400,120], index: 1, kind: input, shape index: {}]   ;;  %s977_s2 = inlined_call_operand.vmem [shape: f32[1,120], index: 2, kind: input, shape index: {}]   ;;  %s978_s3 = inlined_call_operand.vmem [shape: bf16[120,84], index: 3, kind: input, shape index: {}]   ;;  %s979_s4 = inlined_call_operand.vmem [shape: f32[1,84], index: 4, kind: input, shape index: {}]   ;;  %s980_s5 = inlined_call_operand.vmem [shape: bf16[84,10], index: 5, kind: input, shape index: {}]   ;;  %s981_s6 = inlined_call_operand.vmem [shape: f32[1,10], index: 6, kind: input, shape index: {}]   ;;  %s982_s7 = inlined_call_operand.hbm [shape: f32[2,10], index: 7, kind: output, shape index: {}]  }
   0x1   :  { %v707_v0 = vld [vmem:[%s976_s1 + $0x78] sm:$0xff]   ;;  %308 = vmatprep.subr.bf16.mxu1 %v772_v1  ;;  %v710_v4 = vld [vmem:[%s976_s1 + $0x70] sm:$0xff]   ;;  %v713_v7 = vld [vmem:[%s976_s1 + $0x68] sm:$0xff]   ;;  %v96_v27 = vunpack.c.l.s4 %v773_v26  ;;  %vm421_vm1 = vcmask 1043456   ;;  %v774_v39 = vmov 0.0  }
   0x2   :  { %v708_v2 = vld [vmem:[%s976_s1 + $0xb8] sm:$0xff]   ;;  %628 = vmatprep.subr.bf16.mxu0 %v707_v0  ;;  %v711_v5 = vld [vmem:[%s976_s1 + $0xb0] sm:$0xff]   ;;  %v714_v8 = vld [vmem:[%s976_s1 + $0xa8] sm:$0xff]   ;;  %v99_v23 = vshrl.u32 %v98_v18, 7 }
   0x3   :  { %v709_v3 = vld [vmem:[%s976_s1 + $0x38] sm:$0xff]   ;;  %309 = vmatpush1.bf16.msra.mxu1 %v708_v2  ;;  %v712_v6 = vld [vmem:[%s976_s1 + $0x30] sm:$0xff]   ;;  %v715_v9 = vld [vmem:[%s976_s1 + $0x28] sm:$0xff]   ;;  %v97_v31 = vunpack.c.0.s8 %v96_v27 }
   0x4   :  { %629 = vmatpush3.bf16.msra.mxu0 %v709_v3  ;;  %310 = vmatprep.subr.bf16.mxu1 %v772_v1  ;;  %v716_v10 = vld [vmem:[%s976_s1 + $0x60] sm:$0xff]   ;;  %v719_v13 = vld [vmem:[%s976_s1 + $0x58] sm:$0xff]   ;;  %v722_v16 = vld [vmem:[%s976_s1 + $0x50] sm:$0xff]  }
   0x5   :  { %630 = vmatprep.subr.bf16.mxu0 %v710_v4  ;;  %v717_v11 = vld [vmem:[%s976_s1 + $0xa0] sm:$0xff]   ;;  %v720_v14 = vld [vmem:[%s976_s1 + $0x98] sm:$0xff]   ;;  %v723_v17 = vld [vmem:[%s976_s1 + $0x90] sm:$0xff]   ;;  %v100_v34 = vsub.s32 %v97_v31, %v99_v23 }
   0x6   :  { %v718_v12 = vld [vmem:[%s976_s1 + $0x20] sm:$0xff]   ;;  %v721_v15 = vld [vmem:[%s976_s1 + $0x18] sm:$0xff]   ;;  %v724_v19 = vld [vmem:[%s976_s1 + $0x10] sm:$0xff]  }
   0x7   :  { %311 = vmatpush1.bf16.msra.mxu1 %v711_v5  ;;  %v725_v20 = vld [vmem:[%s976_s1 + $0x48] sm:$0xff]   ;;  %v583_v24 = vld.sshfl [vmem:[%s975_s0] sm:$0x33 pattern:$0x75316420] }
   0x8   :  { %631 = vmatpush3.bf16.msra.mxu0 %v712_v6  ;;  %312 = vmatprep.subr.bf16.mxu1 %v772_v1  ;;  %v726_v21 = vld [vmem:[%s976_s1 + $0x88] sm:$0xff]   ;;  %v728_v25 = vld [vmem:[%s976_s1 + $0x40] sm:$0xff]   ;;  %v732_v28 = vld [vmem:[%s978_s3 + $0x38] ss:$0 sps:$4 sm:$0xff]   ;;  %v94_v30 = vcombine.high %v583_v24, %v583_v24  ;;  %v101_v37 = vrot.slane %v583_v24, %v100_v34 }
   0x9   :  { %632 = vmatprep.subr.bf16.mxu0 %v713_v7  ;;  %v727_v22 = vld [vmem:[%s976_s1 + $0x8] sm:$0xff]   ;;  %v729_v29 = vld [vmem:[%s976_s1 + $0x80] sm:$0xff]   ;;  %v423_v33 = vsel %vm421_vm1, %v732_v28, 0 }
   0xa   :  { %v730_v32 = vld [vmem:[%s976_s1] sm:$0xff]   ;;  %v108_v36 = vrot.slane %v94_v30, %v100_v34  ;;  %v109_v40 = vcombine.high %v101_v37, %v101_v37 }
   0xb   :  { %313 = vmatpush1.bf16.msra.mxu1 %v714_v8  ;;  %v731_v35 = vld [vmem:[%s976_s1 + $0xc0] sm:$0xff]  }
   0xc   :  { %633 = vmatpush3.bf16.msra.mxu0 %v715_v9  ;;  %314 = vmatprep.subr.bf16.mxu1 %v772_v1  ;;  %v110_v38 = vcombine.high %v108_v36, %v108_v36 }
   0xd   :  { %634 = vmatprep.subr.bf16.mxu0 %v716_v10  ;;  %300 = vmatprep.mubr.bf16.mxu0 %v108_v36 }
   0xf   :  { %315 = vmatpush1.bf16.msra.mxu1 %v717_v11 }
  0x10   :  { %635 = vmatpush3.bf16.msra.mxu0 %v718_v12  ;;  %316 = vmatprep.subr.bf16.mxu1 %v772_v1 }
  0x11   :  { %636 = vmatprep.subr.bf16.mxu0 %v719_v13 }
  0x13   :  { %317 = vmatpush1.bf16.msra.mxu1 %v720_v14 }
  0x14   :  { %637 = vmatpush3.bf16.msra.mxu0 %v721_v15  ;;  %318 = vmatprep.subr.bf16.mxu1 %v772_v1 }
  0x15   :  { %638 = vmatprep.subr.bf16.mxu0 %v722_v16 }
  0x17   :  { %319 = vmatpush1.bf16.msra.mxu1 %v723_v17 }
  0x18   :  { %639 = vmatpush3.bf16.msra.mxu0 %v724_v19  ;;  %320 = vmatprep.subr.bf16.mxu1 %v772_v1 }
  0x19   :  { %640 = vmatprep.subr.bf16.mxu0 %v725_v20 }
  0x1b   :  { %321 = vmatpush1.bf16.msra.mxu1 %v726_v21 }
  0x1c   :  { %641 = vmatpush3.bf16.msra.mxu0 %v727_v22  ;;  %322 = vmatprep.subr.bf16.mxu1 %v772_v1 }
  0x1d   :  { %642 = vmatprep.subr.bf16.mxu0 %v728_v25 }
  0x1f   :  { %323 = vmatpush1.bf16.msra.mxu1 %v729_v29 }
  0x20   :  { %643 = vmatpush3.bf16.msra.mxu0 %v730_v32  ;;  %338 = vmatprep.subr.bf16.mxu1 %v772_v1 }
  0x21   :  { %666 = vmatprep.subr.bf16.mxu0 %v774_v39 }
  0x23   :  { %301 = vmatmul.mubr.bf16.vlgmr.msra.gmra.mxu0 %v101_v37  ;;  %339 = vmatpush2.bf16.msra.mxu1 %v731_v35 }
  0x24   :  { %12 = vsyncpa [#allocation3], 0  ;;  %609 = vmatprep.mubr.msk.bf16.mxu1 %vm264_vm0, %v110_v38  ;;  %667 = vmatpush3.bf16.msra.mxu0 %v423_v33  ;;  %v733_v41 = vld [vmem:[%s978_s3 + $0x30] sm:$0xff]   ;;  %v734_v42 = vld [vmem:[%s978_s3 + $0x28] sm:$0xff]   ;;  %vm775_vm2 = vmmov 0   ;;  %vm522_vm3 = vcmask 1041408  }
  0x25   :  { %668 = vmatprep.subr.bf16.mxu0 %v774_v39  ;;  %686 = vmatprep.subr.bf16.mxu1 %v774_v39  ;;  %v735_v43 = vld [vmem:[%s978_s3 + $0x20] sm:$0xff]   ;;  %v736_v44 = vld [vmem:[%s978_s3 + $0x18] sm:$0xff]   ;;  %v737_v45 = vld [vmem:[%s978_s3 + $0x10] sm:$0xff]   ;;  %vm417_vm4 = vcmask 982016   ;;  %vm518_vm5 = vcmask 687104   ;;  %vm566_vm6 = vcmask 74752  }
  0x26   :  { %341 = vmatmul.mubr.bf16.vlgmr.msra.gmra.mxu1 %v109_v40  ;;  %v738_v46 = vld [vmem:[%s978_s3 + $0x8] sm:$0xff]   ;;  %v739_v47 = vld [vmem:[%s978_s3] sm:$0xff]   ;;  %682 = vmatprep.mubr.msk.bf16.mxu0 %vm775_vm2, %v774_v39  ;;  %v742_v1 = vld [vmem:[%s980_s5 + $0x18] sm:$0xff]  }
  0x27   :  { %698 = vmatprep.mubr.msk.bf16.mxu1 %vm775_vm2, %v774_v39  ;;  %v740_v48 = vld [vmem:[%s980_s5 + $0x28] ss:$0 sps:$4 sm:$0x33]   ;;  %v582_v52 = vld [vmem:[%s977_s2] ss:$0 sm:$0xff]  ;;  %v743_v2 = vld [vmem:[%s980_s5 + $0x10] sm:$0xff]  }
  0x28   :  { %669 = vmatpush3.bf16.msra.mxu0 %v733_v41  ;;  %v524_v49 = vsel %vm522_vm3, %v740_v48, 0  ;;  %v741_v0 = vld [vmem:[%s980_s5 + $0x20] sm:$0xff]   ;;  %v744_v3 = vld [vmem:[%s980_s5 + $0x8] sm:$0xff]  }
  0x29   :  { %670 = vmatprep.subr.bf16.mxu0 %v774_v39  ;;  %687 = vmatpush3.bf16.msra.mxu1 %v524_v49  ;;  %v745_v4 = vld [vmem:[%s980_s5] sm:$0xff]   ;;  %s776_s5 = smov [#allocation2]  }
  0x2a   :  { %688 = vmatprep.subr.bf16.mxu1 %v774_v39  ;;  %v610_v5 = vld [vmem:[%s979_s4] ss:$0 sm:$0xff]  ;;  %s574_s12 = sshll.u32 %s776_s5, 4  ;;  %s575_s12 = int_to_ptr.vmem [resolvable:$true] %s574_s12 }
  0x2b   :  { %v620_v13 = vld [vmem:[%s981_s6] ss:$0 sm:$0xff]  ;;  %s750_s4 = scalar_lea.vmem %s575_s12, 32  ;;  %p755_p1 = scmp.lt.s32.totalorder %s575_s12, %s575_s12 }
  0x2c   :  { %671 = vmatpush3.bf16.msra.mxu0 %v734_v42  ;;  %p751_p0 = scmp.ne.s32.totalorder %s575_s12, %s750_s4  ;;  %p756_p2 = scmp.lt.s32.totalorder %s750_s4, %s750_s4 }
  0x2d   :  { %672 = vmatprep.subr.bf16.mxu0 %v774_v39  ;;  %689 = vmatpush3.bf16.msra.mxu1 %v741_v0 }
  0x2e   :  { %690 = vmatprep.subr.bf16.mxu1 %v774_v39  ;;  %p757_p3 = por %p756_p2, %p755_p1 }
  0x30   :  { %673 = vmatpush3.bf16.msra.mxu0 %v735_v43  ;;  %p758_p4 = pnand %p757_p3, %p751_p0 }
  0x31   :  { %674 = vmatprep.subr.bf16.mxu0 %v774_v39  ;;  %691 = vmatpush3.bf16.msra.mxu1 %v742_v1 }
  0x32   :  { %692 = vmatprep.subr.bf16.mxu1 %v774_v39 }
  0x34   :  { %675 = vmatpush3.bf16.msra.mxu0 %v736_v44 }
  0x35   :  { %676 = vmatprep.subr.bf16.mxu0 %v774_v39  ;;  %693 = vmatpush3.bf16.msra.mxu1 %v743_v2 }
  0x36   :  { %694 = vmatprep.subr.bf16.mxu1 %v774_v39 }
  0x38   :  { %677 = vmatpush3.bf16.msra.mxu0 %v737_v45 }
  0x39   :  { %678 = vmatprep.subr.bf16.mxu0 %v774_v39  ;;  %695 = vmatpush3.bf16.msra.mxu1 %v744_v3 }
  0x3a   :  { %696 = vmatprep.subr.bf16.mxu1 %v774_v39 }
  0x3c   :  { %679 = vmatpush3.bf16.msra.mxu0 %v738_v46 }
  0x3d   :  { %680 = vmatprep.subr.bf16.mxu0 %v774_v39  ;;  %697 = vmatpush3.bf16.msra.mxu1 %v745_v4 }
  0x40   :  { %681 = vmatpush3.bf16.msra.mxu0 %v739_v47 }
  0xe3   :  { %v644_v50 = vpop.f32.mrf.mxu0 }
  0xe5   :  { %v645_v51 = vpop.f32.mrf.mxu0 }
  0xe6   :  { %v646_v53 = vadd.f32 %v645_v51, %v644_v50  ;;  %v342_v54 = vpop.f32.mrf.mxu1 }
  0xe7   :  { %v647_v55 = vpop.f32.mrf.mxu0 }
  0xe8   :  { %v303_v56 = vadd.f32 %v646_v53, %v582_v52  ;;  %v344_v57 = vpop.f32.mrf.mxu1 }
  0xe9   :  { %v648_v58 = vpop.f32.mrf.mxu0 }
  0xea   :  { %v343_v59 = vadd.f32 %v342_v54, %v303_v56  ;;  %v345_v60 = vpop.f32.mrf.mxu1 }
  0xec   :  { %746 = vtanh.f32 %v343_v59  ;;  %v346_v61 = vpop.f32.mrf.mxu1 }
  0xf9   :  { %v747_v62 = vpop.eup %746 }
  0xfa   :  { %v349_v63 = vpack.c.bf16 %v747_v62, %v747_v62 }
  0xfc   :  { %683 = vmatmul.mubr.msk.bf16.vlgmr.msra.gmra.mxu0 %vm417_vm4, %v349_v63 }
 0x1bc   :  { %v459_v6 = vpop.f32.mrf.mxu0 }
 0x1bd   :  { %v460_v7 = vadd.f32 %v610_v5, %v459_v6 }
 0x1be   :  { %v684_v8 = vpop.f32.mrf.mxu0 }
 0x1bf   :  { %748 = vtanh.f32 %v460_v7 }
 0x1c0   :  { %v462_v9 = vpop.f32.mrf.mxu0 }
 0x1c2   :  { %v685_v10 = vpop.f32.mrf.mxu0 }
 0x1cc   :  { %v749_v11 = vpop.eup %748 }
 0x1cd   :  { %v466_v12 = vpack.c.bf16 %v749_v11, %v749_v11 }
 0x1cf   :  { %699 = vmatmul.mubr.msk.bf16.vlgmr.msra.gmra.mxu1 %vm518_vm5, %v466_v12 }
 0x28f   :  { %v560_v14 = vpop.f32.mrf.mxu1 }
 0x290   :  { %v561_v15 = vadd.f32 %v620_v13, %v560_v14 }
 0x291   :  { %v700_v16 = vpop.f32.mrf.mxu1 }
 0x292   :  { %567 = vst.msk [vmem:[#allocation2] sm:$0x3] %vm566_vm6, %v561_v15 }
 0x293   :  { %v563_v17 = vpop.f32.mrf.mxu1 }
 0x294   :  { %761 = shalt.err (!%p758_p4)
}
 0x295   :  { %577 = dma.vmem_to_hbm [thread:$0]  %s575_s12, 32, %s982_s7, [#allocation3]   ;;  %v701_v18 = vpop.f32.mrf.mxu1 }
 0x296   :  { %770 = dma.done.wait [#allocation3], 32  }
 0x297   :  { %771 = vsyncadd [#allocation3], 4294967264 }
 0x298   :  { %581 = vsyncpa [#allocation3], 1 }

</bundles_post_ra>
